<compile_context>
chip_gen: v6e
topology: v6e:2x2x1
jax: 0.10.0
libtpu: 0.0.40
codegen_flags: <defaults>
</compile_context>

<pallas_src>
import jax
import jax.numpy as jnp
from jax.experimental import pallas as pl
from jax.experimental.pallas import tpu as pltpu

VOCAB = 128          # vocab size (lane-aligned)
EMBED = 128          # embedding dim (lane-aligned)
CONTEXT_SIZE = 2
N_CTX = 2 * CONTEXT_SIZE
BATCH = 512          # context windows per forward call
BATCH_TILE = 256     # rows per grid step: fills the 256-row MXU dim (v6e/v7x)


def cbow_kernel(idx_ref, proj_ref, b_ref, out_ref):
    tb = out_ref.shape[0]
    v = proj_ref.shape[0]
    n_ctx = idx_ref.shape[1]

    # --- context-word count matrix (sum of one-hots), built on the VPU ------
    idx = idx_ref[...]                                          # (TB, N_CTX) i32
    lane_ids = jax.lax.broadcasted_iota(jnp.int32, (tb, v), 1)  # (TB, V)
    counts = (lane_ids == idx[:, 0:1]).astype(jnp.int32)
    for i in range(1, n_ctx):                                   # static trip count (3)
        counts = counts + (lane_ids == idx[:, i:i + 1]).astype(jnp.int32)

    # --- fused gather + linear on the MXU: counts @ (E @ W^T) ---------------
    # bf16 x bf16 -> f32 accumulation: single-pass native MXU path.
    logits = jnp.dot(counts.astype(proj_ref.dtype), proj_ref[...],
                     preferred_element_type=jnp.float32)
    logits = logits + b_ref[...]                                # (TB, V) f32

    # --- log_softmax over the vocab axis (f32) -------------------------------
    m = jnp.max(logits, axis=-1, keepdims=True)
    shifted = logits - m
    lse = jnp.log(jnp.sum(jnp.exp(shifted), axis=-1, keepdims=True))
    out_ref[...] = shifted - lse


def cbow_forward(indices, embedding, weight, bias):
    """indices: (B, N_CTX) int32; embedding: (V, D) bf16; weight: (V, D) bf16;
    bias: (1, V) f32.  Returns (B, V) f32 log-probabilities."""
    B, n_ctx = indices.shape
    V, D = embedding.shape
    assert B % BATCH_TILE == 0

    # Fuse embedding-sum and linear layer: P = E @ W^T, computed once per call
    # in f32 and rounded to bf16 (32 KiB at V=128).  Valid while V is small.
    proj = jnp.dot(embedding.astype(jnp.float32),
                   weight.astype(jnp.float32).T,
                   precision=jax.lax.Precision.HIGHEST).astype(jnp.bfloat16)

    return pl.pallas_call(
        cbow_kernel,
        out_shape=jax.ShapeDtypeStruct((B, V), jnp.float32),
        grid_spec=pltpu.PrefetchScalarGridSpec(
            num_scalar_prefetch=0,
            grid=(B // BATCH_TILE,),
            in_specs=[
                pl.BlockSpec((BATCH_TILE, n_ctx), lambda b: (b, 0)),  # indices
                pl.BlockSpec((V, V), lambda b: (0, 0)),               # P = E @ W^T
                pl.BlockSpec((1, V), lambda b: (0, 0)),               # bias
            ],
            out_specs=pl.BlockSpec((BATCH_TILE, V), lambda b: (b, 0)),
        ),
        compiler_params=pltpu.CompilerParams(
            dimension_semantics=("parallel",)),   # v7x: one step per TensorCore
    )(indices, proj, bias)


def cbow_reference(indices, embedding, weight, bias):
    ctx = embedding[indices].astype(jnp.float32)          # (B, N_CTX, D)
    summed = jnp.sum(ctx, axis=1)                         # (B, D) f32
    logits = jnp.dot(summed, weight.astype(jnp.float32).T,
                     precision=jax.lax.Precision.HIGHEST) + bias
    return jax.nn.log_softmax(logits, axis=-1)


if __name__ == "__main__":
    key = jax.random.PRNGKey(0)
    k_emb, k_w, k_b, k_idx = jax.random.split(key, 4)

    embedding = jax.random.normal(k_emb, (VOCAB, EMBED), jnp.float32).astype(jnp.bfloat16)
    weight = (jax.random.normal(k_w, (VOCAB, EMBED), jnp.float32) * 0.1).astype(jnp.bfloat16)
    bias = (jax.random.normal(k_b, (VOCAB,), jnp.float32) * 0.1).reshape(1, VOCAB)
    indices = jax.random.randint(k_idx, (BATCH, N_CTX), 0, VOCAB, dtype=jnp.int32)

    out = jax.block_until_ready(cbow_forward(indices, embedding, weight, bias))

    ref = cbow_reference(indices, embedding, weight, bias)
    assert out.shape == (BATCH, VOCAB) and out.dtype == jnp.float32
    # Kernel uses the native bf16 MXU path (fused P rounded to bf16); reference
    # is f32 HIGHEST.  Mean error must be tight, worst-case bounded by bf16 ulps.
    err = jnp.abs(out - ref)
    assert float(err.mean()) < 5e-3, float(err.mean())
    assert jnp.allclose(out, ref, atol=5e-2, rtol=1e-2), float(err.max())

    print("KERNEL_OK")
</pallas_src>

<mosaic_0001>
module attributes {stable_mosaic.version = 11 : i64} {
  func.func @cbow_kernel(%arg0: i32, %arg1: memref<256x4xi32, #tpu.memory_space<vmem>>, %arg2: memref<128x128xbf16, #tpu.memory_space<vmem>>, %arg3: memref<1x128xf32, #tpu.memory_space<vmem>>, %arg4: memref<256x128xf32, #tpu.memory_space<vmem>>) attributes {dimension_semantics = [#tpu.dimension_semantics<parallel>], iteration_bounds = array<i64: 2>, scalar_prefetch = 0 : i64, scratch_operands = 0 : i64, tpu.core_type = #tpu.core_type<tc>, window_params = [{transform_indices = @transform_0, window_bounds = array<i64: 256, 4>}, {pipeline_mode = #tpu.pipeline_mode<synchronous>, transform_indices = @transform_1, window_bounds = array<i64: 128, 128>}, {pipeline_mode = #tpu.pipeline_mode<synchronous>, transform_indices = @transform_2, window_bounds = array<i64: 1, 128>}, {transform_indices = @transform_3, window_bounds = array<i64: 256, 128>}]} {
    %c0 = arith.constant 0 : index
    %c0_0 = arith.constant 0 : index
    %0 = vector.load %arg1[%c0, %c0_0] : memref<256x4xi32, #tpu.memory_space<vmem>>, vector<256x4xi32>
    %1 = tpu.iota {dimensions = array<i32: 1>} : vector<256x128xi32>
    %2 = vector.extract_strided_slice %0 {offsets = [0, 0], sizes = [256, 1], strides = [1, 1]} : vector<256x4xi32> to vector<256x1xi32>
    %3 = vector.broadcast %2 : vector<256x1xi32> to vector<256x128xi32>
    %4 = arith.cmpi eq, %1, %3 : vector<256x128xi32>
    %5 = arith.extui %4 : vector<256x128xi1> to vector<256x128xi32>
    %6 = vector.extract_strided_slice %0 {offsets = [0, 1], sizes = [256, 1], strides = [1, 1]} : vector<256x4xi32> to vector<256x1xi32>
    %7 = vector.broadcast %6 : vector<256x1xi32> to vector<256x128xi32>
    %8 = arith.cmpi eq, %1, %7 : vector<256x128xi32>
    %9 = arith.extui %8 : vector<256x128xi1> to vector<256x128xi32>
    %10 = arith.addi %5, %9 : vector<256x128xi32>
    %11 = vector.extract_strided_slice %0 {offsets = [0, 2], sizes = [256, 1], strides = [1, 1]} : vector<256x4xi32> to vector<256x1xi32>
    %12 = vector.broadcast %11 : vector<256x1xi32> to vector<256x128xi32>
    %13 = arith.cmpi eq, %1, %12 : vector<256x128xi32>
    %14 = arith.extui %13 : vector<256x128xi1> to vector<256x128xi32>
    %15 = arith.addi %10, %14 : vector<256x128xi32>
    %16 = vector.extract_strided_slice %0 {offsets = [0, 3], sizes = [256, 1], strides = [1, 1]} : vector<256x4xi32> to vector<256x1xi32>
    %17 = vector.broadcast %16 : vector<256x1xi32> to vector<256x128xi32>
    %18 = arith.cmpi eq, %1, %17 : vector<256x128xi32>
    %19 = arith.extui %18 : vector<256x128xi1> to vector<256x128xi32>
    %20 = arith.addi %15, %19 : vector<256x128xi32>
    %21 = arith.sitofp %20 : vector<256x128xi32> to vector<256x128xbf16>
    %c0_1 = arith.constant 0 : index
    %c0_2 = arith.constant 0 : index
    %22 = vector.load %arg2[%c0_1, %c0_2] : memref<128x128xbf16, #tpu.memory_space<vmem>>, vector<128x128xbf16>
    %cst = arith.constant dense<0.000000e+00> : vector<256x128xf32>
    %23 = tpu.matmul %21, %22, %cst {dimension_numbers = #tpu.dot_dimension_numbers<[1], [0], [0], [1], [0, 0, 1, 1], [], []>} : vector<256x128xbf16>, vector<128x128xbf16>, vector<256x128xf32> -> vector<256x128xf32>
    %c0_3 = arith.constant 0 : index
    %c0_4 = arith.constant 0 : index
    %24 = vector.load %arg3[%c0_3, %c0_4] : memref<1x128xf32, #tpu.memory_space<vmem>>, vector<1x128xf32>
    %25 = vector.broadcast %24 : vector<1x128xf32> to vector<256x128xf32>
    %26 = arith.addf %23, %25 : vector<256x128xf32>
    %cst_5 = arith.constant dense<0xFF800000> : vector<256xf32>
    %27 = vector.multi_reduction <maximumf>, %26, %cst_5 [1] : vector<256x128xf32> to vector<256xf32>
    %28 = vector.shape_cast %27 : vector<256xf32> to vector<256x1xf32>
    %29 = vector.broadcast %28 : vector<256x1xf32> to vector<256x128xf32>
    %30 = arith.subf %26, %29 : vector<256x128xf32>
    %31 = math.exp %30 : vector<256x128xf32>
    %cst_6 = arith.constant dense<0.000000e+00> : vector<256xf32>
    %32 = vector.multi_reduction <add>, %31, %cst_6 [1] : vector<256x128xf32> to vector<256xf32>
    %33 = vector.shape_cast %32 : vector<256xf32> to vector<256x1xf32>
    %34 = math.log %33 : vector<256x1xf32>
    %35 = vector.broadcast %34 : vector<256x1xf32> to vector<256x128xf32>
    %36 = arith.subf %30, %35 : vector<256x128xf32>
    %c0_7 = arith.constant 0 : index
    %c0_8 = arith.constant 0 : index
    %37 = vector.load %arg4[%c0_7, %c0_8] : memref<256x128xf32, #tpu.memory_space<vmem>>, vector<256x128xf32>
    tpu.vector_store %arg4[%c0_7, %c0_8], %36 {strides = array<i32>} : memref<256x128xf32, #tpu.memory_space<vmem>>, vector<256x128xf32>,
    return
  }
  func.func @transform_0(%arg0: i32) -> (i32, i32) {
    %c0_i32 = arith.constant 0 : i32
    %c0_i32_0 = arith.constant 0 : i32
    return %arg0, %c0_i32 : i32, i32
  }
  func.func @transform_1(%arg0: i32) -> (i32, i32) {
    %c0_i32 = arith.constant 0 : i32
    %c0_i32_0 = arith.constant 0 : i32
    %c0_i32_1 = arith.constant 0 : i32
    return %c0_i32, %c0_i32_0 : i32, i32
  }
  func.func @transform_2(%arg0: i32) -> (i32, i32) {
    %c0_i32 = arith.constant 0 : i32
    %c0_i32_0 = arith.constant 0 : i32
    %c0_i32_1 = arith.constant 0 : i32
    return %c0_i32, %c0_i32_0 : i32, i32
  }
  func.func @transform_3(%arg0: i32) -> (i32, i32) {
    %c0_i32 = arith.constant 0 : i32
    %c0_i32_0 = arith.constant 0 : i32
    return %arg0, %c0_i32 : i32, i32
  }
}

</mosaic_0001>

<bundles_post_ra>
// kernel: tpu_custom_call.1
= control target key start
LH: loop header
LB: loop body
LE: loop exit
PB: predicated region body
PF: predicated region fallthrough
CT: control target
= control target key end

     0   :  { %8 = vsyncpa [#allocation3], 0  ;;  %s3365_s0 = inlined_call_operand.vmem [shape: s32[512,4], index: 0, kind: input, shape index: {}]   ;;  %s3366_s1 = inlined_call_operand.vmem [shape: bf16[128,128], index: 1, kind: input, shape index: {}]   ;;  %s3367_s2 = inlined_call_operand.vmem [shape: f32[1,128], index: 2, kind: input, shape index: {}]   ;;  %s3368_s3 = inlined_call_operand.hbm [shape: f32[512,128], index: 3, kind: output, shape index: {}]  }
   0x1   :  { %10 = vsyncpa [#allocation3 + $0x1], 0  ;;  %s2048_s12 = smov 0   ;;  %s2050_s13 = smov 0  }
   0x2   :  { %s2052_s14 = smov 0   ;;  %s2054_s15 = smov 0  }
   0x3 LB: > { %s2069_s16 = sadd.s32 4294967295, %s2019_s15   ;;  %s1651_s17 = sadd.s32 4294967294, %s2019_s15   ;;  %s2019_s15 = sphi %s2054_s15, %s3433_s15   ;;  %s2015_s14 = sphi %s2052_s14, %s3432_s14   ;;  %s2011_s13 = sphi %s2050_s13, %s3431_s13   ;;  %s2007_s12 = sphi %s2048_s12, %s3430_s12  }
   0x4   : > { %s2073_s18 = sadd.s32 1, %s2019_s15   ;;  %s91_s19 = sadd.s32 1, %s2015_s14 }
   0x5   : > { %s88_s20 = ssub.s32 %s2019_s15, %s2073_s18  ;;  %p101_p0 = scmp.ne.s32.totalorder %s2015_s14, %s2011_s13 }
   0x6   : > { %p89_p1 = scmp.eq.s32.totalorder %s88_s20, 0  ;;  %p102_p2 = scmp.eq.s32.totalorder %s2069_s16, 1 }
   0x7   : > { %p107_p3 = scmp.ne.s32.totalorder %s2011_s13, %s2007_s12  ;;  %p108_p4 = scmp.eq.s32.totalorder %s1651_s17, 1 }
   0x8   : > { %s2084_s21 = scalar_select %p89_p1, %s2015_s14, %s91_s19  }
   0x9   : > { %p2086_p5 = por %p102_p2, %p101_p0  ;;  %p2090_p6 = por %p108_p4, %p107_p3 }
   0xa   : > { %p1654_p7 = scmp.ge.s32.totalorder %s2019_s15, 1  ;;  %p141_p8 = scmp.lt.s32.totalorder %s2019_s15, 3 }
   0xc   : > { %p142_p9 = pnand %p1654_p7, %p141_p8 }
   0xe   : > { %145 = sbr.rel (%p142_p9) target bundleno = 980 (0x3d4), region = 32 }
  0x13   : > { %s1656_s24 = sshll.u32 %s2069_s16, 5  ;;  %v3369_v0 = vmov 0   ;;  %v3372_v33 = vmov 1   ;;  %v3371_v34 = vmov 2   ;;  %v3374_v35 = vmov 3   ;;  %v1823_v54 = vld [vmem:[%s3366_s1 + $0x38] sm:$0xff]  }
  0x14   : > { %1807 = vset.pattern.permute.xlu1 %v3369_v0  ;;  %1806 = vset.pattern.permute.xlu0 %v3369_v0  ;;  %p166_p10 = scmp.lt.s32.totalorder %s1656_s24, 63  ;;  %v1824_v57 = vld [vmem:[%s3366_s1 + $0x30] sm:$0xff]   ;;  %v1825_v60 = vld [vmem:[%s3366_s1 + $0x28] sm:$0xff]   ;;  %v1826_v63 = vld [vmem:[%s3366_s1 + $0x20] sm:$0xff]   ;;  %s162_s29 = sand.u32 1, %s2011_s13  }
  0x15   : > { %1697 = vmatprep.subr.bf16.mxu0 %v1823_v54  ;;  %1745 = vmatprep.subr.bf16.mxu1 %v1823_v54  ;;  %s1655_s30 = sshll.u32 %s162_s29, 8  ;;  %s1672_s5 = sshll.u32 %s2069_s16, 12 }
  0x16   : > { %s3435_s24 = smov (!%p166_p10, %s1656_s24), 63  ;;  %1698 = vmatpush3.bf16.msra.mxu0 %v1823_v54  ;;  %1753 = vmatpush3.bf16.msra.mxu1 %v1823_v54  ;;  %s3249_s4 = scalar_lea.vmem [#allocation2], %s1655_s30 }
  0x17   : > { %s1657_s25 = sshll.u32 %s3435_s24, 3  ;;  %1699 = vmatprep.subr.bf16.mxu0 %v1824_v57  ;;  %1746 = vmatprep.subr.bf16.mxu1 %v1824_v57  ;;  %s1589_s6 = sshll.u32 %s3249_s4, 4  ;;  %s3319_s6 = int_to_ptr.vmem [resolvable:$true] %s1589_s6 }
  0x18   : > { %s2102_s28 = scalar_lea.vmem %s3365_s0, %s1657_s25  ;;  %s3317_s9 = scalar_lea.hbm %s3368_s3, %s1672_s5 }
  0x19   : > { %v2105_v1 = vld [vmem:[%s2102_s28 + $0x10] sm:$0xff]  ;;  %v2108_v2 = vld [vmem:[%s2102_s28] sm:$0xff]  ;;  %v2113_v3 = vld [vmem:[%s2102_s28 + $0x18] sm:$0xff]  ;;  %s3325_s16 = scalar_lea.sflag [#allocation3], %s162_s29  ;;  %s1959_s10 = scalar_lea.vmem %s3319_s6, 4096 }
  0x1a   : > { %214 = vperm.xlu1 %1807, %v2105_v1   ;;  %208 = vperm.xlu0 %1806, %v2108_v2   ;;  %v2116_v4 = vld [vmem:[%s2102_s28 + $0x8] sm:$0xff]  ;;  %v2124_v6 = vld [vmem:[%s2102_s28 + $0x20] sm:$0xff]  ;;  %v2129_v7 = vld [vmem:[%s2102_s28 + $0x38] sm:$0xff]  ;;  %p1960_p11 = scmp.ne.s32.totalorder %s3319_s6, %s1959_s10  ;;  %s2025_s11 = smov [#allocation2]  }
  0x1b   : > { %v2121_v5 = vld [vmem:[%s2102_s28 + $0x28] sm:$0xff]  ;;  %v2132_v8 = vld [vmem:[%s2102_s28 + $0x30] sm:$0xff]  ;;  %v2140_v10 = vld [vmem:[%s2102_s28 + $0x40] sm:$0xff]  ;;  %1700 = vmatpush3.bf16.msra.mxu0 %v1824_v57  ;;  %1754 = vmatpush3.bf16.msra.mxu1 %v1824_v57  ;;  %s1963_s17 = sshll.u32 %s2025_s11, 4  ;;  %s1964_s17 = int_to_ptr.vmem [resolvable:$false] %s1963_s17 }
  0x1c   : > { %v2137_v9 = vld [vmem:[%s2102_s28 + $0x48] sm:$0xff]  ;;  %v2145_v11 = vld [vmem:[%s2102_s28 + $0x58] sm:$0xff]  ;;  %v2148_v12 = vld [vmem:[%s2102_s28 + $0x50] sm:$0xff]  ;;  %1701 = vmatprep.subr.bf16.mxu0 %v1825_v60  ;;  %1747 = vmatprep.subr.bf16.mxu1 %v1825_v60  ;;  %p1961_p12 = pnand %p1960_p11, %p2086_p5  ;;  %s1965_s19 = scalar_lea.vmem %s1964_s17, 8192 }
  0x1d   : > { %v2153_v13 = vld [vmem:[%s2102_s28 + $0x68] sm:$0xff]  ;;  %v2156_v14 = vld [vmem:[%s2102_s28 + $0x60] sm:$0xff]  ;;  %v2161_v15 = vld [vmem:[%s2102_s28 + $0x78] sm:$0xff]  ;;  %p1966_p0 = scmp.lt.s32.totalorder %s3319_s6, %s1964_s17  ;;  %p1967_p1 = scmp.lt.s32.totalorder %s1965_s19, %s1959_s10 }
  0x1e   : > { %217 = vperm.xlu1 %1807, %v2113_v3   ;;  %211 = vperm.xlu0 %1806, %v2116_v4   ;;  %v2164_v16 = vld [vmem:[%s2102_s28 + $0x70] sm:$0xff]  ;;  %v2169_v17 = vld [vmem:[%s2102_s28 + $0x88] sm:$0xff]  ;;  %v2172_v18 = vld [vmem:[%s2102_s28 + $0x80] sm:$0xff]  ;;  %p1962_p13 = pneg %p1961_p12 }
  0x1f   : > { %v2177_v19 = vld [vmem:[%s2102_s28 + $0x98] sm:$0xff]  ;;  %v2180_v20 = vld [vmem:[%s2102_s28 + $0x90] sm:$0xff]  ;;  %v2185_v21 = vld [vmem:[%s2102_s28 + $0xa8] sm:$0xff]  ;;  %1702 = vmatpush3.bf16.msra.mxu0 %v1825_v60  ;;  %1755 = vmatpush3.bf16.msra.mxu1 %v1825_v60  ;;  %p1968_p2 = por %p1967_p1, %p1966_p0 }
  0x20   : > { %v2188_v22 = vld [vmem:[%s2102_s28 + $0xa0] sm:$0xff]  ;;  %v2193_v23 = vld [vmem:[%s2102_s28 + $0xb8] sm:$0xff]  ;;  %v2196_v24 = vld [vmem:[%s2102_s28 + $0xb0] sm:$0xff]  ;;  %1703 = vmatprep.subr.bf16.mxu0 %v1826_v63  ;;  %1748 = vmatprep.subr.bf16.mxu1 %v1826_v63 }
  0x21   : > { %v2201_v25 = vld [vmem:[%s2102_s28 + $0xc8] sm:$0xff]  ;;  %v2204_v26 = vld [vmem:[%s2102_s28 + $0xc0] sm:$0xff]  ;;  %v2209_v27 = vld [vmem:[%s2102_s28 + $0xd8] sm:$0xff]  ;;  %p1969_p3 = pnand %p1968_p2, %p1962_p13 }
  0x22   : > { %223 = vperm.xlu1 %1807, %v2121_v5   ;;  %220 = vperm.xlu0 %1806, %v2124_v6   ;;  %v2212_v28 = vld [vmem:[%s2102_s28 + $0xd0] sm:$0xff]  ;;  %v2217_v29 = vld [vmem:[%s2102_s28 + $0xe8] sm:$0xff]  ;;  %v2220_v30 = vld [vmem:[%s2102_s28 + $0xe0] sm:$0xff] }
  0x23   : > { %v2225_v31 = vld [vmem:[%s2102_s28 + $0xf8] sm:$0xff]  ;;  %v2228_v32 = vld [vmem:[%s2102_s28 + $0xf0] sm:$0xff]  ;;  %1704 = vmatpush3.bf16.msra.mxu0 %v1826_v63  ;;  %1756 = vmatpush3.bf16.msra.mxu1 %v1826_v63  ;;  %v1829_v57 = vld [vmem:[%s3366_s1 + $0x8] sm:$0xff]  }
  0x26   : > { %229 = vperm.xlu1 %1807, %v2129_v7   ;;  %226 = vperm.xlu0 %1806, %v2132_v8  }
  0x2a   : > { %235 = vperm.xlu1 %1807, %v2137_v9   ;;  %232 = vperm.xlu0 %1806, %v2140_v10  }
  0x2e   : > { %241 = vperm.xlu1 %1807, %v2145_v11   ;;  %238 = vperm.xlu0 %1806, %v2148_v12  }
  0x32   : > { %247 = vperm.xlu1 %1807, %v2153_v13   ;;  %244 = vperm.xlu0 %1806, %v2156_v14  }
  0x36   : > { %253 = vperm.xlu1 %1807, %v2161_v15   ;;  %250 = vperm.xlu0 %1806, %v2164_v16  }
  0x3a   : > { %259 = vperm.xlu1 %1807, %v2169_v17   ;;  %256 = vperm.xlu0 %1806, %v2172_v18  }
  0x3e   : > { %265 = vperm.xlu1 %1807, %v2177_v19   ;;  %262 = vperm.xlu0 %1806, %v2180_v20  }
  0x42   : > { %271 = vperm.xlu1 %1807, %v2185_v21   ;;  %268 = vperm.xlu0 %1806, %v2188_v22  }
  0x46   : > { %277 = vperm.xlu1 %1807, %v2193_v23   ;;  %274 = vperm.xlu0 %1806, %v2196_v24  }
  0x4a   : > { %283 = vperm.xlu1 %1807, %v2201_v25   ;;  %280 = vperm.xlu0 %1806, %v2204_v26  }
  0x4e   : > { %289 = vperm.xlu1 %1807, %v2209_v27   ;;  %286 = vperm.xlu0 %1806, %v2212_v28  }
  0x52   : > { %295 = vperm.xlu1 %1807, %v2217_v29   ;;  %292 = vperm.xlu0 %1806, %v2220_v30  }
  0x56   : > { %301 = vperm.xlu1 %1807, %v2225_v31   ;;  %298 = vperm.xlu0 %1806, %v2228_v32  }
  0x5a   : > { %1809 = vset.pattern.permute.xlu1 %v3372_v33  ;;  %1808 = vset.pattern.permute.xlu0 %v3372_v33 }
  0x5b   : > { %371 = vperm.xlu1 %1809, %v2116_v4   ;;  %368 = vperm.xlu0 %1808, %v2108_v2  }
  0x5f   : > { %374 = vperm.xlu1 %1809, %v2105_v1   ;;  %377 = vperm.xlu0 %1808, %v2113_v3  }
  0x63   : > { %380 = vperm.xlu1 %1809, %v2124_v6   ;;  %383 = vperm.xlu0 %1808, %v2121_v5  }
  0x67   : > { %386 = vperm.xlu1 %1809, %v2132_v8   ;;  %389 = vperm.xlu0 %1808, %v2129_v7  }
  0x6b   : > { %392 = vperm.xlu1 %1809, %v2140_v10   ;;  %395 = vperm.xlu0 %1808, %v2137_v9  }
  0x6f   : > { %398 = vperm.xlu1 %1809, %v2148_v12   ;;  %401 = vperm.xlu0 %1808, %v2145_v11  }
  0x73   : > { %416 = vperm.xlu1 %1809, %v2172_v18   ;;  %419 = vperm.xlu0 %1808, %v2169_v17  }
  0x77   : > { %422 = vperm.xlu1 %1809, %v2180_v20   ;;  %425 = vperm.xlu0 %1808, %v2177_v19  }
  0x7b   : > { %1810 = vset.pattern.permute.xlu1 %v3371_v34  ;;  %431 = vperm.xlu0 %1808, %v2185_v21  }
  0x7c   : > { %560 = vperm.xlu1 %1810, %v2108_v2  }
  0x7f   : > { %440 = vperm.xlu0 %1808, %v2204_v26  }
  0x80   : > { %608 = vperm.xlu1 %1810, %v2172_v18  }
  0x83   : > { %449 = vperm.xlu0 %1808, %v2209_v27  }
  0x84   : > { %611 = vperm.xlu1 %1810, %v2169_v17  }
  0x87   : > { %407 = vperm.xlu0 %1808, %v2153_v13  }
  0x88   : > { %569 = vperm.xlu1 %1810, %v2113_v3  }
  0x8b   : > { %410 = vperm.xlu0 %1808, %v2164_v16  }
  0x8c   : > { %617 = vperm.xlu1 %1810, %v2177_v19  }
  0x8f   : > { %458 = vperm.xlu0 %1808, %v2228_v32  }
  0x90   : > { %1811 = vset.pattern.permute.xlu1 %v3374_v35 }
  0x91   : > { %755 = vperm.xlu1 %1811, %v2116_v4  }
  0x93   : > { %1819 = vset.pattern.permute.xlu0 %v3371_v34 }
  0x94   : > { %563 = vperm.xlu0 %1819, %v2116_v4  }
  0x95   : > { %v2266_v36 = vpop.permute.xlu1 %214  ;;  %800 = vperm.xlu1 %1811, %v2172_v18   ;;  %v2269_v37 = vpop.permute.xlu0 %208 }
  0x98   : > { %566 = vperm.xlu0 %1819, %v2105_v1  }
  0x99   : > { %v2272_v38 = vpop.permute.xlu1 %217  ;;  %758 = vperm.xlu1 %1811, %v2105_v1   ;;  %v2275_v39 = vpop.permute.xlu0 %211 }
  0x9c   : > { %614 = vperm.xlu0 %1819, %v2180_v20  }
  0x9d   : > { %v2278_v40 = vpop.permute.xlu1 %223  ;;  %806 = vperm.xlu1 %1811, %v2180_v20   ;;  %v2281_v41 = vpop.permute.xlu0 %220 }
  0xa0   : > { %572 = vperm.xlu0 %1819, %v2124_v6  }
  0xa1   : > { %v2284_v42 = vpop.permute.xlu1 %229  ;;  %1812 = vset.pattern.permute.xlu1 %v3372_v33  ;;  %v2287_v43 = vpop.permute.xlu0 %226 }
  0xa2   : > { %428 = vperm.xlu1 %1812, %v2188_v22  }
  0xa4   : > { %623 = vperm.xlu0 %1819, %v2185_v21  }
  0xa5   : > { %v2291_v44 = vpop.permute.xlu1 %235  ;;  %v2293_v45 = vpop.permute.xlu0 %232 }
  0xa6   : > { %434 = vperm.xlu1 %1812, %v2196_v24  }
  0xa8   : > { %581 = vperm.xlu0 %1819, %v2129_v7  }
  0xa9   : > { %v2297_v46 = vpop.permute.xlu1 %241  ;;  %v2299_v47 = vpop.permute.xlu0 %238 }
  0xaa   : > { %437 = vperm.xlu1 %1812, %v2193_v23  }
  0xac   : > { %629 = vperm.xlu0 %1819, %v2193_v23  }
  0xad   : > { %v2303_v48 = vpop.permute.xlu1 %247  ;;  %v2305_v49 = vpop.permute.xlu0 %244 }
  0xae   : > { %3378 = vst [vmem:[#allocation5_spill] sm:$0xff] %v2303_v48  ;;  %3379 = vst [vmem:[#allocation6_spill] sm:$0xff] %v2305_v49  ;;  %1813 = vset.pattern.permute.xlu1 %v3371_v34 }
  0xaf   : > { %575 = vperm.xlu1 %1813, %v2121_v5  }
  0xb0   : > { %587 = vperm.xlu0 %1819, %v2137_v9  }
  0xb1   : > { %v2310_v50 = vpop.permute.xlu1 %253  ;;  %v2312_v51 = vpop.permute.xlu0 %250 }
  0xb2   : > { %3380 = vst [vmem:[#allocation7_spill] sm:$0xff] %v2310_v50  ;;  %3381 = vst [vmem:[#allocation8_spill] sm:$0xff] %v2312_v51 }
  0xb3   : > { %620 = vperm.xlu1 %1813, %v2188_v22  }
  0xb4   : > { %590 = vperm.xlu0 %1819, %v2148_v12  }
  0xb5   : > { %v2316_v52 = vpop.permute.xlu1 %259  ;;  %v2318_v53 = vpop.permute.xlu0 %256 }
  0xb7   : > { %578 = vperm.xlu1 %1813, %v2132_v8  }
  0xb8   : > { %638 = vperm.xlu0 %1819, %v2212_v28  }
  0xb9   : > { %v2325_v55 = vpop.permute.xlu1 %265  ;;  %v2327_v56 = vpop.permute.xlu0 %262 }
  0xbb   : > { %626 = vperm.xlu1 %1813, %v2196_v24  }
  0xbc   : > { %596 = vperm.xlu0 %1819, %v2156_v14  }
  0xbd   : > { %v2334_v58 = vpop.permute.xlu1 %271  ;;  %v2336_v59 = vpop.permute.xlu0 %268 }
  0xbf   : > { %1814 = vset.pattern.permute.xlu1 %v3374_v35 }
  0xc0   : > { %764 = vperm.xlu1 %1814, %v2124_v6   ;;  %647 = vperm.xlu0 %1819, %v2217_v29   ;;  %v1827_v6 = vld [vmem:[%s3366_s1 + $0x18] sm:$0xff]  }
  0xc1   : > { %v2344_v61 = vpop.permute.xlu1 %277  ;;  %v2346_v62 = vpop.permute.xlu0 %274  ;;  %1705 = vmatprep.subr.bf16.mxu0 %v1827_v6  ;;  %1749 = vmatprep.subr.bf16.mxu1 %v1827_v6 }
  0xc2   : > { %1706 = vmatpush3.bf16.msra.mxu0 %v1827_v6  ;;  %1757 = vmatpush3.bf16.msra.mxu1 %v1827_v6 }
  0xc4   : > { %812 = vperm.xlu1 %1814, %v2188_v22   ;;  %605 = vperm.xlu0 %1819, %v2161_v15   ;;  %v1828_v22 = vld [vmem:[%s3366_s1 + $0x10] sm:$0xff]  }
  0xc5   : > { %v2353_v1 = vpop.permute.xlu1 %283  ;;  %v2355_v4 = vpop.permute.xlu0 %280  ;;  %1707 = vmatprep.subr.bf16.mxu0 %v1828_v22  ;;  %1750 = vmatprep.subr.bf16.mxu1 %v1828_v22 }
  0xc6   : > { %3382 = vst [vmem:[#allocation9_spill] sm:$0xff] %v2353_v1  ;;  %3383 = vst [vmem:[#allocation10_spill] sm:$0xff] %v2355_v4  ;;  %1708 = vmatpush3.bf16.msra.mxu0 %v1828_v22  ;;  %1758 = vmatpush3.bf16.msra.mxu1 %v1828_v22 }
  0xc7   : > { %1709 = vmatprep.subr.bf16.mxu0 %v1829_v57  ;;  %1751 = vmatprep.subr.bf16.mxu1 %v1829_v57 }
  0xc8   : > { %815 = vperm.xlu1 %1814, %v2185_v21   ;;  %653 = vperm.xlu0 %1819, %v2225_v31  }
  0xc9   : > { %v2362_v18 = vpop.permute.xlu1 %289  ;;  %v2364_v20 = vpop.permute.xlu0 %286 }
  0xca   : > { %3384 = vst [vmem:[#allocation11_spill] sm:$0xff] %v2362_v18  ;;  %3385 = vst [vmem:[#allocation12_spill] sm:$0xff] %v2364_v20  ;;  %1710 = vmatpush3.bf16.msra.mxu0 %v1829_v57  ;;  %1759 = vmatpush3.bf16.msra.mxu1 %v1829_v57  ;;  %v205_v18 = vlaneseq }
  0xcc   : > { %773 = vperm.xlu1 %1814, %v2129_v7   ;;  %1821 = vset.pattern.permute.xlu0 %v3374_v35 }
  0xcd   : > { %v2371_v54 = vpop.permute.xlu1 %295  ;;  %752 = vperm.xlu0 %1821, %v2108_v2   ;;  %v2374_v21 = vpop.permute.xlu0 %292  ;;  %v1830_v2 = vld [vmem:[%s3366_s1] sm:$0xff]  }
  0xce   : > { %3386 = vst [vmem:[#allocation13_spill] sm:$0xff] %v2371_v54  ;;  %3387 = vst [vmem:[#allocation14_spill] sm:$0xff] %v2374_v21  ;;  %1711 = vmatprep.subr.bf16.mxu0 %v1830_v2  ;;  %1752 = vmatprep.subr.bf16.mxu1 %v1830_v2 }
  0xcf   : > { %1712 = vmatpush3.bf16.msra.mxu0 %v1830_v2  ;;  %1760 = vmatpush3.bf16.msra.mxu1 %v1830_v2 }
  0xd0   : > { %821 = vperm.xlu1 %1814, %v2193_v23  }
  0xd1   : > { %v2380_v60 = vpop.permute.xlu1 %301  ;;  %803 = vperm.xlu0 %1821, %v2169_v17   ;;  %v2383_v7 = vpop.permute.xlu0 %298 }
  0xd2   : > { %3388 = vst [vmem:[#allocation15_spill] sm:$0xff] %v2380_v60  ;;  %3389 = vst [vmem:[#allocation16_spill] sm:$0xff] %v2383_v7 }
  0xd4   : > { %1815 = vset.pattern.permute.xlu1 %v3372_v33 }
  0xd5   : > { %443 = vperm.xlu1 %1815, %v2201_v25   ;;  %761 = vperm.xlu0 %1821, %v2113_v3  }
  0xd6   : > { %v2391_v23 = vpop.permute.xlu1 %371  ;;  %v2393_v63 = vpop.permute.xlu0 %368 }
  0xd9   : > { %446 = vperm.xlu1 %1815, %v2212_v28   ;;  %809 = vperm.xlu0 %1821, %v2177_v19  }
  0xda   : > { %v2397_v17 = vpop.permute.xlu1 %374  ;;  %v2399_v6 = vpop.permute.xlu0 %377 }
  0xdd   : > { %1816 = vset.pattern.permute.xlu1 %v3371_v34  ;;  %767 = vperm.xlu0 %1821, %v2121_v5  }
  0xde   : > { %v2403_v3 = vpop.permute.xlu1 %380  ;;  %584 = vperm.xlu1 %1816, %v2140_v10   ;;  %v2406_v22 = vpop.permute.xlu0 %383 }
  0xe1   : > { %770 = vperm.xlu0 %1821, %v2132_v8  }
  0xe2   : > { %v2409_v57 = vpop.permute.xlu1 %386  ;;  %632 = vperm.xlu1 %1816, %v2204_v26   ;;  %v2412_v19 = vpop.permute.xlu0 %389 }
  0xe5   : > { %818 = vperm.xlu0 %1821, %v2196_v24  }
  0xe6   : > { %v2415_v2 = vpop.permute.xlu1 %392  ;;  %635 = vperm.xlu1 %1816, %v2201_v25   ;;  %v2418_v5 = vpop.permute.xlu0 %395 }
  0xe7   : > { %3390 = vst [vmem:[#allocation17_spill] sm:$0xff] %v2415_v2  ;;  %3391 = vst [vmem:[#allocation18_spill] sm:$0xff] %v2418_v5  ;;  %v3401_v5 = vmov 3   ;;  %v2511_v2 = vand.u32 127, %v205_v18 }
  0xe9   : > { %776 = vperm.xlu0 %1821, %v2140_v10   ;;  %vm305_vm0 = vcmp.eq.s32.totalorder %v2511_v2, %v2266_v36  ;;  %vm303_vm1 = vcmp.eq.s32.totalorder %v2511_v2, %v2269_v37  ;;  %vm306_vm2 = vcmp.eq.s32.totalorder %v2511_v2, %v2272_v38  ;;  %vm304_vm3 = vcmp.eq.s32.totalorder %v2511_v2, %v2275_v39 }
  0xea   : > { %v2421_v0 = vpop.permute.xlu1 %398  ;;  %593 = vperm.xlu1 %1816, %v2145_v11   ;;  %v2424_v8 = vpop.permute.xlu0 %401  ;;  %vm308_vm4 = vcmp.eq.s32.totalorder %v2511_v2, %v2278_v40  ;;  %vm307_vm5 = vcmp.eq.s32.totalorder %v2511_v2, %v2281_v41  ;;  %vm310_vm6 = vcmp.eq.s32.totalorder %v2511_v2, %v2284_v42  ;;  %vm309_vm7 = vcmp.eq.s32.totalorder %v2511_v2, %v2287_v43 }
  0xeb   : > { %3392 = vst [vmem:[#allocation19_spill] sm:$0xff] %v2421_v0  ;;  %3393 = vst [vmem:[#allocation20_spill] sm:$0xff] %v2424_v8  ;;  %vm320_vm8 = vcmp.eq.s32.totalorder %v2511_v2, %v2316_v52  ;;  %vm319_vm9 = vcmp.eq.s32.totalorder %v2511_v2, %v2318_v53  ;;  %vm322_vm10 = vcmp.eq.s32.totalorder %v2511_v2, %v2325_v55 }
  0xec   : > { %vm321_vm11 = vcmp.eq.s32.totalorder %v2511_v2, %v2327_v56  ;;  %vm324_vm12 = vcmp.eq.s32.totalorder %v2511_v2, %v2334_v58  ;;  %vm323_vm13 = vcmp.eq.s32.totalorder %v2511_v2, %v2336_v59  ;;  %vm464_vm14 = vcmp.eq.s32.totalorder %v2511_v2, %v2391_v23 }
  0xed   : > { %827 = vperm.xlu0 %1821, %v2201_v25   ;;  %vm326_vm15 = vcmp.eq.s32.totalorder %v2511_v2, %v2344_v61 }
  0xee   : > { %v2427_v34 = vpop.permute.xlu1 %416  ;;  %641 = vperm.xlu1 %1816, %v2209_v27   ;;  %v2430_v24 = vpop.permute.xlu0 %419 }
  0xf1   : > { %785 = vperm.xlu0 %1821, %v2145_v11  }
  0xf2   : > { %v2433_v33 = vpop.permute.xlu1 %422  ;;  %1817 = vset.pattern.permute.xlu1 %v3374_v35  ;;  %v2436_v10 = vpop.permute.xlu0 %425 }
  0xf3   : > { %779 = vperm.xlu1 %1817, %v2137_v9  }
  0xf5   : > { %833 = vperm.xlu0 %1821, %v2209_v27   ;;  %v3397_v27 = vmov 1  }
  0xf6   : > { %v2440_v60 = vpop.permute.xlu0 %431 }
  0xf7   : > { %824 = vperm.xlu1 %1817, %v2204_v26   ;;  %v2443_v25 = vpop.permute.xlu1 %560 }
  0xf9   : > { %791 = vperm.xlu0 %1821, %v2153_v13  }
  0xfa   : > { %v2446_v7 = vpop.permute.xlu0 %440 }
  0xfb   : > { %3394 = vst [vmem:[#allocation21_spill] sm:$0xff] %v2446_v7  ;;  %782 = vperm.xlu1 %1817, %v2148_v12   ;;  %v2449_v11 = vpop.permute.xlu1 %608 }
  0xfd   : > { %794 = vperm.xlu0 %1821, %v2164_v16  }
  0xfe   : > { %v2452_v35 = vpop.permute.xlu0 %449 }
  0xff   : > { %3395 = vst [vmem:[#allocation22_spill] sm:$0xff] %v2452_v35  ;;  %830 = vperm.xlu1 %1817, %v2212_v28   ;;  %v2455_v9 = vpop.permute.xlu1 %611 }
 0x101   : > { %842 = vperm.xlu0 %1821, %v2228_v32  }
 0x102   : > { %v2458_v26 = vpop.permute.xlu0 %407 }
 0x103   : > { %3396 = vst [vmem:[#allocation23_spill] sm:$0xff] %v2458_v26  ;;  %1818 = vset.pattern.permute.xlu1 %v3397_v27  ;;  %v2461_v21 = vpop.permute.xlu1 %569  ;;  %v3400_v26 = vmov 2  }
 0x104   : > { %404 = vperm.xlu1 %1818, %v2156_v14  }
 0x106   : > { %v2464_v12 = vpop.permute.xlu0 %410 }
 0x107   : > { %3398 = vst [vmem:[#allocation24_spill] sm:$0xff] %v2464_v12  ;;  %v2466_v54 = vpop.permute.xlu1 %617 }
 0x108   : > { %452 = vperm.xlu1 %1818, %v2220_v30  }
 0x10a   : > { %v2469_v51 = vpop.permute.xlu0 %458 }
 0x10b   : > { %3399 = vst [vmem:[#allocation25_spill] sm:$0xff] %v2469_v51 }
 0x10c   : > { %455 = vperm.xlu1 %1818, %v2217_v29   ;;  %v2472_v28 = vpop.permute.xlu1 %755 }
 0x10f   : > { %v2474_v50 = vpop.permute.xlu0 %563 }
 0x110   : > { %413 = vperm.xlu1 %1818, %v2161_v15   ;;  %v2477_v27 = vpop.permute.xlu1 %800 }
 0x113   : > { %v2479_v49 = vpop.permute.xlu0 %566 }
 0x114   : > { %461 = vperm.xlu1 %1818, %v2225_v31   ;;  %v2482_v12 = vpop.permute.xlu1 %758 }
 0x117   : > { %v2484_v48 = vpop.permute.xlu0 %614 }
 0x118   : > { %1820 = vset.pattern.permute.xlu1 %v3400_v26  ;;  %v2487_v51 = vpop.permute.xlu1 %806 }
 0x119   : > { %599 = vperm.xlu1 %1820, %v2153_v13  }
 0x11b   : > { %v2490_v35 = vpop.permute.xlu0 %572 }
 0x11d   : > { %644 = vperm.xlu1 %1820, %v2220_v30   ;;  %v2493_v7 = vpop.permute.xlu1 %428 }
 0x11f   : > { %v2495_v0 = vpop.permute.xlu0 %623 }
 0x121   : > { %602 = vperm.xlu1 %1820, %v2164_v16   ;;  %v2498_v20 = vpop.permute.xlu1 %434 }
 0x123   : > { %v2500_v8 = vpop.permute.xlu0 %581 }
 0x125   : > { %650 = vperm.xlu1 %1820, %v2228_v32   ;;  %v2503_v26 = vpop.permute.xlu1 %437 }
 0x127   : > { %v2505_v13 = vpop.permute.xlu0 %629 }
 0x129   : > { %1822 = vset.pattern.permute.xlu1 %v3401_v5 }
 0x12a   : > { %788 = vperm.xlu1 %1822, %v2156_v14   ;;  %v2509_v4 = vpop.permute.xlu1 %575 }
 0x12b   : > { %v2513_v16 = vpop.permute.xlu0 %587 }
 0x12e   : > { %836 = vperm.xlu1 %1822, %v2220_v30   ;;  %v2516_v1 = vpop.permute.xlu1 %620  ;;  %v3402_v30 = vmov 0  }
 0x12f   : > { %v2524_v14 = vpop.permute.xlu0 %590  ;;  %v337_v32 = vsel %vm305_vm0, 1, %v3402_v30  ;;  %v335_v36 = vsel %vm303_vm1, 1, %v3402_v30  ;;  %v338_v37 = vsel %vm306_vm2, 1, %v3402_v30  ;;  %v336_v39 = vsel %vm304_vm3, 1, %v3402_v30 }
 0x130   : > { %v340_v40 = vsel %vm308_vm4, 1, %v3402_v30  ;;  %v339_v42 = vsel %vm307_vm5, 1, %v3402_v30  ;;  %v342_v43 = vsel %vm310_vm6, 1, %v3402_v30  ;;  %v352_v52 = vsel %vm320_vm8, 1, %v3402_v30 }
 0x131   : > { %v351_v53 = vsel %vm319_vm9, 1, %v3402_v30  ;;  %vm325_vm0 = vcmp.eq.s32.totalorder %v2511_v2, %v2346_v62  ;;  %v354_v56 = vsel %vm322_vm10, 1, %v3402_v30  ;;  %v353_v58 = vsel %vm321_vm11, 1, %v3402_v30 }
 0x132   : > { %839 = vperm.xlu1 %1822, %v2217_v29   ;;  %v2540_v38 = vpop.permute.xlu1 %578  ;;  %v341_v29 = vsel %vm309_vm7, 1, %v3402_v30  ;;  %vm463_vm1 = vcmp.eq.s32.totalorder %v2511_v2, %v2393_v63  ;;  %vm465_vm2 = vcmp.eq.s32.totalorder %v2511_v2, %v2397_v17  ;;  %v2581_v61 = vsel %vm324_vm12, 1, %v3402_v30 }
 0x133   : > { %v2548_v41 = vpop.permute.xlu0 %638  ;;  %v2584_v62 = vsel %vm323_vm13, 1, %v3402_v30  ;;  %vm466_vm3 = vcmp.eq.s32.totalorder %v2511_v2, %v2399_v6  ;;  %v2590_v18 = vsel %vm326_vm15, 1, %v3402_v30  ;;  %v2593_v23 = vsel %vm325_vm0, 1, %v3402_v30 }
 0x134   : > { %3403 = vst [vmem:[#allocation26_spill] sm:$0xff] %v2548_v41  ;;  %vm467_vm4 = vcmp.eq.s32.totalorder %v2511_v2, %v2403_v3  ;;  %vm468_vm5 = vcmp.eq.s32.totalorder %v2511_v2, %v2406_v22  ;;  %v495_v63 = vsel %vm463_vm1, 1, %v3402_v30  ;;  %v497_v17 = vsel %vm465_vm2, 1, %v3402_v30 }
 0x135   : > { %vm469_vm6 = vcmp.eq.s32.totalorder %v2511_v2, %v2409_v57  ;;  %vm470_vm7 = vcmp.eq.s32.totalorder %v2511_v2, %v2412_v19  ;;  %v498_v5 = vsel %vm466_vm3, 1, %v3402_v30  ;;  %vm479_vm8 = vcmp.eq.s32.totalorder %v2511_v2, %v2427_v34 }
 0x136   : > { %797 = vperm.xlu1 %1822, %v2161_v15   ;;  %v2570_v55 = vpop.permute.xlu1 %626  ;;  %v496_v15 = vsel %vm464_vm14, 1, %v3402_v30  ;;  %vm480_vm9 = vcmp.eq.s32.totalorder %v2511_v2, %v2430_v24  ;;  %v499_v57 = vsel %vm467_vm4, 1, %v3402_v30  ;;  %vm481_vm10 = vcmp.eq.s32.totalorder %v2511_v2, %v2433_v33 }
 0x137   : > { %v2578_v59 = vpop.permute.xlu0 %596  ;;  %v528_v6 = vadd.s32 %v496_v15, %v336_v39  ;;  %vm482_vm11 = vcmp.eq.s32.totalorder %v2511_v2, %v2436_v10  ;;  %v529_v19 = vadd.s32 %v497_v17, %v337_v32  ;;  %v501_v34 = vsel %vm469_vm6, 1, %v3402_v30 }
 0x138   : > { %3404 = vst [vmem:[#allocation27_spill] sm:$0xff] %v2578_v59  ;;  %v500_v59 = vsel %vm468_vm5, 1, %v3402_v30  ;;  %v502_v24 = vsel %vm470_vm7, 1, %v3402_v30  ;;  %v530_v39 = vadd.s32 %v498_v5, %v338_v37  ;;  %v511_v15 = vsel %vm479_vm8, 1, %v3402_v30 }
 0x139   : > { %vm656_vm12 = vcmp.eq.s32.totalorder %v2511_v2, %v2474_v50  ;;  %v2627_v41 = vadd.s32 %v499_v57, %v339_v42  ;;  %v2629_v33 = vadd.s32 %v500_v59, %v340_v40  ;;  %v513_v10 = vsel %vm481_vm10, 1, %v3402_v30 }
 0x13a   : > { %845 = vperm.xlu1 %1822, %v2225_v31   ;;  %v527_v31 = vadd.s32 %v495_v63, %v335_v36  ;;  %v514_v32 = vsel %vm482_vm11, 1, %v3402_v30  ;;  %v2637_v37 = vadd.s32 %v501_v34, %v341_v29  ;;  %v2639_v17 = vadd.s32 %v502_v24, %v342_v43 }
 0x13b   : > { %v2611_v3 = vpop.permute.xlu1 %764  ;;  %v2613_v22 = vpop.permute.xlu0 %647  ;;  %vm671_vm13 = vcmp.eq.s32.totalorder %v2511_v2, %v2449_v11  ;;  %vm657_vm14 = vcmp.eq.s32.totalorder %v2511_v2, %v2479_v49  ;;  %v543_v50 = vadd.s32 %v511_v15, %v351_v53  ;;  %v688_v42 = vsel %vm656_vm12, 1, %v3402_v30 }
 0x13c   : > { %3405 = vst [vmem:[#allocation28_spill] sm:$0xff] %v2613_v22  ;;  %v512_v22 = vsel %vm480_vm9, 1, %v3402_v30  ;;  %vm673_vm15 = vcmp.eq.s32.totalorder %v2511_v2, %v2484_v48  ;;  %v545_v59 = vadd.s32 %v513_v10, %v353_v58  ;;  %v546_v5 = vadd.s32 %v514_v32, %v354_v56 }
 0x13d   : > { %v544_v40 = vadd.s32 %v512_v22, %v352_v52  ;;  %vm484_vm0 = vcmp.eq.s32.totalorder %v2511_v2, %v2440_v60  ;;  %vm863_vm1 = vcmp.eq.s32.totalorder %v2511_v2, %v2477_v27  ;;  %vm655_vm2 = vcmp.eq.s32.totalorder %v2511_v2, %v2443_v25 }
 0x13e   : > { %v703_v49 = vsel %vm671_vm13, 1, %v3402_v30  ;;  %vm672_vm3 = vcmp.eq.s32.totalorder %v2511_v2, %v2455_v9  ;;  %v689_v11 = vsel %vm657_vm14, 1, %v3402_v30  ;;  %vm848_vm4 = vcmp.eq.s32.totalorder %v2511_v2, %v2472_v28 }
 0x13f   : > { %v2633_v36 = vpop.permute.xlu1 %812  ;;  %v2635_v63 = vpop.permute.xlu0 %605  ;;  %v720_v60 = vadd.s32 %v688_v42, %v528_v6  ;;  %vm849_vm5 = vcmp.eq.s32.totalorder %v2511_v2, %v2482_v12  ;;  %v705_v27 = vsel %vm673_vm15, 1, %v3402_v30  ;;  %v516_v25 = vsel %vm484_vm0, 1, %v3402_v30 }
 0x140   : > { %vm658_vm6 = vcmp.eq.s32.totalorder %v2511_v2, %v2461_v21  ;;  %v895_v29 = vsel %vm863_vm1, 1, %v3402_v30  ;;  %vm865_vm7 = vcmp.eq.s32.totalorder %v2511_v2, %v2487_v51  ;;  %v687_v52 = vsel %vm655_vm2, 1, %v3402_v30 }
 0x141   : > { %v735_v53 = vadd.s32 %v703_v49, %v543_v50  ;;  %vm674_vm8 = vcmp.eq.s32.totalorder %v2511_v2, %v2466_v54  ;;  %v721_v28 = vadd.s32 %v689_v11, %v529_v19  ;;  %v704_v12 = vsel %vm672_vm3, 1, %v3402_v30 }
 0x142   : > { %v880_v56 = vsel %vm848_vm4, 1, %v3402_v30  ;;  %v881_v21 = vsel %vm849_vm5, 1, %v3402_v30  ;;  %v737_v58 = vadd.s32 %v705_v27, %v545_v59  ;;  %v690_v51 = vsel %vm658_vm6, 1, %v3402_v30 }
 0x143   : > { %v816_v43 = vpop.permute.xlu1 %815  ;;  %v2658_v48 = vpop.permute.xlu0 %653  ;;  %v897_v22 = vsel %vm865_vm7, 1, %v3402_v30  ;;  %v912_v34 = vadd.s32 %v880_v56, %v720_v60  ;;  %v927_v54 = vadd.s32 %v895_v29, %v735_v53  ;;  %v548_v19 = vadd.s32 %v516_v25, %v2581_v61 }
 0x144   : > { %v719_v24 = vadd.s32 %v687_v52, %v527_v31  ;;  %v706_v9 = vsel %vm674_vm8, 1, %v3402_v30  ;;  %v2687_v15 = vadd.s32 %v881_v21, %v721_v28  ;;  %vm659_vm10 = vcmp.eq.s32.totalorder %v2511_v2, %v2490_v35 }
 0x145   : > { %vm483_vm11 = vcmp.eq.s32.totalorder %v2511_v2, %v2493_v7  ;;  %v736_v32 = vadd.s32 %v704_v12, %v544_v40  ;;  %v722_v50 = vadd.s32 %v690_v51, %v530_v39  ;;  %v2694_v42 = vadd.s32 %v897_v22, %v737_v58 }
 0x146   : > { %v738_v59 = vadd.s32 %v706_v9, %v546_v5  ;;  %vm676_vm12 = vcmp.eq.s32.totalorder %v2511_v2, %v2495_v0  ;;  %v944_v11 = vcvt.s32.f32 %v912_v34  ;;  %v959_v60 = vcvt.s32.f32 %v927_v54 }
 0x147   : > { %v2680_v6 = vpop.permute.xlu1 %773  ;;  %v691_v35 = vsel %vm659_vm10, 1, %v3402_v30  ;;  %v515_v7 = vsel %vm483_vm11, 1, %v3402_v30  ;;  %v945_v39 = vcvt.s32.f32 %v2687_v15  ;;  %vm675_vm14 = vcmp.eq.s32.totalorder %v2511_v2, %v2516_v1 }
 0x148   : > { %v753_v57 = vpop.permute.xlu0 %752  ;;  %vm868_vm15 = vcmp.eq.s32.totalorder %v2511_v2, %v816_v43  ;;  %v961_v0 = vcvt.s32.f32 %v2694_v42  ;;  %v708_v27 = vsel %vm676_vm12, 1, %v3402_v30  ;;  %v723_v52 = vadd.s32 %v691_v35, %v2627_v41 }
 0x149   : > { %vm847_vm9 = vcmp.eq.s32.totalorder %v2511_v2, %v753_v57  ;;  %v547_v53 = vadd.s32 %v515_v7, %v2584_v62  ;;  %vm485_vm0 = vcmp.eq.s32.totalorder %v2511_v2, %v2498_v20  ;;  %vm867_vm1 = vcmp.eq.s32.totalorder %v2511_v2, %v2633_v36 }
 0x14a   : > { %v879_v10 = vsel %vm847_vm9, 1, %v3402_v30  ;;  %v707_v28 = vsel %vm675_vm14, 1, %v3402_v30  ;;  %v900_v12 = vsel %vm868_vm15, 1, %v3402_v30  ;;  %v740_v41 = vadd.s32 %v708_v27, %v548_v19 }
 0x14b   : > { %v2696_v61 = vpop.permute.xlu1 %821  ;;  %v911_v31 = vadd.s32 %v879_v10, %v719_v24  ;;  %vm662_vm3 = vcmp.eq.s32.totalorder %v2511_v2, %v2500_v8  ;;  %vm660_vm4 = vcmp.eq.s32.totalorder %v2511_v2, %v2509_v4  ;;  %vm851_vm5 = vcmp.eq.s32.totalorder %v2511_v2, %v2611_v3 }
 0x14c   : > { %v804_v49 = vpop.permute.xlu0 %803  ;;  %v899_v36 = vsel %vm867_vm1, 1, %v3402_v30  ;;  %v517_v51 = vsel %vm485_vm0, 1, %v3402_v30  ;;  %vm486_vm6 = vcmp.eq.s32.totalorder %v2511_v2, %v2503_v26  ;;  %v739_v22 = vadd.s32 %v707_v28, %v547_v53 }
 0x14d   : > { %vm864_vm13 = vcmp.eq.s32.totalorder %v2511_v2, %v804_v49  ;;  %v943_v40 = vcvt.s32.f32 %v911_v31  ;;  %v932_v57 = vadd.s32 %v900_v12, %v740_v41  ;;  %v692_v54 = vsel %vm660_vm4, 1, %v3402_v30 }
 0x14e   : > { %v896_v5 = vsel %vm864_vm13, 1, %v3402_v30  ;;  %vm661_vm7 = vcmp.eq.s32.totalorder %v2511_v2, %v2540_v38  ;;  %v694_v20 = vsel %vm662_vm3, 1, %v3402_v30  ;;  %v883_v26 = vsel %vm851_vm5, 1, %v3402_v30 }
 0x14f   : > { %v975_v25 = vpack.c.bf16 %v944_v11, %v943_v40  ;;  %v928_v29 = vadd.s32 %v896_v5, %v736_v32  ;;  %v931_v24 = vadd.s32 %v899_v36, %v739_v22  ;;  %v518_v15 = vsel %vm486_vm6, 1, %v3402_v30 }
 0x150   : > { %v2716_v1 = vpop.permute.xlu1 %443  ;;  %v762_v43 = vpop.permute.xlu0 %761  ;;  %vm854_vm9 = vcmp.eq.s32.totalorder %v2511_v2, %v2680_v6  ;;  %vm678_vm10 = vcmp.eq.s32.totalorder %v2511_v2, %v2505_v13  ;;  %v724_v8 = vadd.s32 %v692_v54, %v2629_v33  ;;  %v693_v32 = vsel %vm661_vm7, 1, %v3402_v30 }
 0x151   : > { %vm850_vm2 = vcmp.eq.s32.totalorder %v2511_v2, %v762_v43  ;;  %1713 = vmatprep.mubr.bf16.mxu0 %v975_v25  ;;  %v960_v56 = vcvt.s32.f32 %v928_v29  ;;  %vm677_vm11 = vcmp.eq.s32.totalorder %v2511_v2, %v2570_v55  ;;  %v915_v42 = vadd.s32 %v883_v26, %v723_v52 }
 0x152   : > { %v882_v62 = vsel %vm850_vm2, 1, %v3402_v30  ;;  %v963_v11 = vcvt.s32.f32 %v931_v24  ;;  %v886_v33 = vsel %vm854_vm9, 1, %v3402_v30  ;;  %v550_v35 = vadd.s32 %v518_v15, %v2590_v18  ;;  %v3412_v15 = vld [vmem:[#allocation12_spill] sm:$0xff] }
 0x153   : > { %v914_v21 = vadd.s32 %v882_v62, %v722_v50  ;;  %v983_v58 = vpack.c.bf16 %v960_v56, %v959_v60  ;;  %v964_v50 = vcvt.s32.f32 %v932_v57  ;;  %vm870_vm13 = vcmp.eq.s32.totalorder %v2511_v2, %v2696_v61 }
 0x154   : > { %v2735_v4 = vpop.permute.xlu1 %446  ;;  %v810_v34 = vpop.permute.xlu0 %809  ;;  %v709_v6 = vsel %vm677_vm11, 1, %v3402_v30  ;;  %v947_v18 = vcvt.s32.f32 %v915_v42  ;;  %v549_v13 = vadd.s32 %v517_v51, %v2593_v23  ;;  %vm312_vm15 = vcmp.eq.s32.totalorder %v2511_v2, %v2291_v44  ;;  %v3413_v42 = vld [vmem:[#allocation19_spill] sm:$0xff] }
 0x155   : > { %v946_v19 = vcvt.s32.f32 %v914_v21  ;;  %vm866_vm8 = vcmp.eq.s32.totalorder %v2511_v2, %v810_v34  ;;  %1729 = vmatprep.mubr.bf16.mxu1 %v983_v58  ;;  %v985_v27 = vpack.c.bf16 %v964_v50, %v963_v11  ;;  %vm311_vm0 = vcmp.eq.s32.totalorder %v2511_v2, %v2293_v45  ;;  %v3406_v21 = vld [vmem:[#allocation9_spill] sm:$0xff]  ;;  %v3409_v45 = vld [vmem:[#allocation18_spill] sm:$0xff] }
 0x156   : > { %v898_v9 = vsel %vm866_vm8, 1, %v3402_v30  ;;  %vm314_vm1 = vcmp.eq.s32.totalorder %v2511_v2, %v2297_v46  ;;  %vm313_vm2 = vcmp.eq.s32.totalorder %v2511_v2, %v2299_v47  ;;  %v741_v23 = vadd.s32 %v709_v6, %v549_v13  ;;  %v3407_v34 = vld [vmem:[#allocation17_spill] sm:$0xff]  ;;  %v3411_v47 = vld [vmem:[#allocation20_spill] sm:$0xff] }
 0x157   : > { %v930_v38 = vadd.s32 %v898_v9, %v738_v59  ;;  %v976_v10 = vpack.c.bf16 %v946_v19, %v945_v39  ;;  %v726_v59 = vadd.s32 %v694_v20, %v2639_v17  ;;  %v710_v17 = vsel %vm678_vm10, 1, %v3402_v30  ;;  %v3408_v19 = vld [vmem:[#allocation10_spill] sm:$0xff]  ;;  %v3410_v9 = vld [vmem:[#allocation11_spill] sm:$0xff] }
 0x158   : > { %v768_v3 = vpop.permute.xlu0 %767  ;;  %v725_v39 = vadd.s32 %v693_v32, %v2637_v37  ;;  %v742_v55 = vadd.s32 %v710_v17, %v550_v35  ;;  %v344_v36 = vsel %vm312_vm15, 1, %v3402_v30  ;;  %vm328_vm4 = vcmp.eq.s32.totalorder %v2511_v2, %v3406_v21 }
 0x159   : > { %v962_v31 = vcvt.s32.f32 %v930_v38  ;;  %vm852_vm12 = vcmp.eq.s32.totalorder %v2511_v2, %v768_v3  ;;  %v2760_v49 = vpop.permute.xlu1 %584  ;;  %1714 = vmatmul.mubr.bf16.vlgmr.msra.gmra.mxu0 %v976_v10  ;;  %v918_v25 = vadd.s32 %v886_v33, %v726_v59  ;;  %v343_v22 = vsel %vm311_vm0, 1, %v3402_v30 }
 0x15a   : > { %v884_v60 = vsel %vm852_vm12, 1, %v3402_v30  ;;  %v346_v57 = vsel %vm314_vm1, 1, %v3402_v30  ;;  %v2814_v44 = vsel %vm313_vm2, 1, %v3402_v30  ;;  %vm471_vm5 = vcmp.eq.s32.totalorder %v2511_v2, %v3407_v34 }
 0x15b   : > { %v916_v7 = vadd.s32 %v884_v60, %v724_v8  ;;  %v984_v40 = vpack.c.bf16 %v962_v31, %v961_v0  ;;  %v902_v0 = vsel %vm870_vm13, 1, %v3402_v30  ;;  %v950_v28 = vcvt.s32.f32 %v918_v25  ;;  %v3414_v60 = vld [vmem:[#allocation21_spill] sm:$0xff] }
 0x15c   : > { %v771_v5 = vpop.permute.xlu0 %770  ;;  %v934_v12 = vadd.s32 %v902_v0, %v742_v55  ;;  %vm327_vm6 = vcmp.eq.s32.totalorder %v2511_v2, %v3408_v19  ;;  %vm472_vm7 = vcmp.eq.s32.totalorder %v2511_v2, %v3409_v45  ;;  %v360_v24 = vsel %vm328_vm4, 1, %v3402_v30 }
 0x15d   : > { %v948_v29 = vcvt.s32.f32 %v916_v7  ;;  %vm853_vm14 = vcmp.eq.s32.totalorder %v2511_v2, %v771_v5  ;;  %v2781_v61 = vpop.permute.xlu1 %632  ;;  %1730 = vmatmul.mubr.bf16.vlgmr.msra.gmra.mxu1 %v984_v40  ;;  %vm330_vm8 = vcmp.eq.s32.totalorder %v2511_v2, %v3410_v9  ;;  %vm474_vm9 = vcmp.eq.s32.totalorder %v2511_v2, %v3411_v47 }
 0x15e   : > { %v885_v37 = vsel %vm853_vm14, 1, %v3402_v30  ;;  %1733 = vmatprep.mubr.bf16.mxu1 %v985_v27  ;;  %v966_v20 = vcvt.s32.f32 %v934_v12  ;;  %vm663_vm10 = vcmp.eq.s32.totalorder %v2511_v2, %v2760_v49  ;;  %vm329_vm11 = vcmp.eq.s32.totalorder %v2511_v2, %v3412_v15 }
 0x15f   : > { %v917_v52 = vadd.s32 %v885_v37, %v725_v39  ;;  %v977_v53 = vpack.c.bf16 %v948_v29, %v947_v18  ;;  %v503_v38 = vsel %vm471_vm5, 1, %v3402_v30  ;;  %vm664_vm12 = vcmp.eq.s32.totalorder %v2511_v2, %v2513_v16  ;;  %v3415_v18 = vld [vmem:[#allocation22_spill] sm:$0xff] }
 0x160   : > { %v819_v43 = vpop.permute.xlu0 %818  ;;  %v359_v8 = vsel %vm327_vm6, 1, %v3402_v30  ;;  %v504_v32 = vsel %vm472_vm7, 1, %v3402_v30  ;;  %vm488_vm13 = vcmp.eq.s32.totalorder %v2511_v2, %v2716_v1  ;;  %v362_v3 = vsel %vm330_vm8, 1, %v3402_v30 }
 0x161   : > { %v949_v56 = vcvt.s32.f32 %v917_v52  ;;  %vm869_vm3 = vcmp.eq.s32.totalorder %v2511_v2, %v819_v43  ;;  %v636_v41 = vpop.permute.xlu1 %635  ;;  %1717 = vmatprep.mubr.bf16.mxu0 %v977_v53  ;;  %vm473_vm15 = vcmp.eq.s32.totalorder %v2511_v2, %v3413_v42  ;;  %v506_v31 = vsel %vm474_vm9, 1, %v3402_v30 }
 0x162   : > { %v901_v62 = vsel %vm869_vm3, 1, %v3402_v30  ;;  %v695_v49 = vsel %vm663_vm10, 1, %v3402_v30  ;;  %v361_v11 = vsel %vm329_vm11, 1, %v3402_v30  ;;  %v535_v33 = vadd.s32 %v503_v38, %v343_v22 }
 0x163   : > { %v933_v58 = vadd.s32 %v901_v62, %v741_v23  ;;  %v978_v51 = vpack.c.bf16 %v950_v28, %v949_v56  ;;  %vm487_vm0 = vcmp.eq.s32.totalorder %v2511_v2, %v3414_v60  ;;  %v696_v1 = vsel %vm664_vm12, 1, %v3402_v30 }
 0x164   : > { %v777_v54 = vpop.permute.xlu0 %776  ;;  %v536_v35 = vadd.s32 %v504_v32, %v344_v36  ;;  %v520_v7 = vsel %vm488_vm13, 1, %v3402_v30  ;;  %vm680_vm1 = vcmp.eq.s32.totalorder %v2511_v2, %v636_v41  ;;  %v505_v17 = vsel %vm473_vm15, 1, %v3402_v30 }
 0x165   : > { %v965_v26 = vcvt.s32.f32 %v933_v58  ;;  %v594_v46 = vpop.permute.xlu1 %593  ;;  %1718 = vmatmul.mubr.bf16.gmra.mxu0 %v978_v51  ;;  %vm855_vm14 = vcmp.eq.s32.totalorder %v2511_v2, %v777_v54  ;;  %v538_v39 = vadd.s32 %v506_v31, %v346_v57  ;;  %v727_v6 = vadd.s32 %v695_v49, %v535_v33 }
 0x166   : > { %v887_v40 = vsel %vm855_vm14, 1, %v3402_v30  ;;  %vm679_vm2 = vcmp.eq.s32.totalorder %v2511_v2, %v2781_v61  ;;  %v519_v27 = vsel %vm487_vm0, 1, %v3402_v30  ;;  %vm490_vm3 = vcmp.eq.s32.totalorder %v2511_v2, %v3415_v18 }
 0x167   : > { %v986_v10 = vpack.c.bf16 %v966_v20, %v965_v26  ;;  %v728_v16 = vadd.s32 %v696_v1, %v536_v35  ;;  %vm665_vm5 = vcmp.eq.s32.totalorder %v2511_v2, %v2524_v14  ;;  %v552_v25 = vadd.s32 %v520_v7, %v360_v24  ;;  %v3416_v20 = vld [vmem:[#allocation26_spill] sm:$0xff] }
 0x168   : > { %v828_v50 = vpop.permute.xlu0 %827  ;;  %v712_v29 = vsel %vm680_vm1, 1, %v3402_v30  ;;  %v919_v13 = vadd.s32 %v887_v40, %v727_v6  ;;  %vm489_vm6 = vcmp.eq.s32.totalorder %v2511_v2, %v2735_v4  ;;  %v711_v61 = vsel %vm679_vm2, 1, %v3402_v30 }
 0x169   : > { %v642_v59 = vpop.permute.xlu1 %641  ;;  %1734 = vmatmul.mubr.bf16.gmra.mxu1 %v986_v10  ;;  %vm872_vm4 = vcmp.eq.s32.totalorder %v2511_v2, %v828_v50  ;;  %vm666_vm7 = vcmp.eq.s32.totalorder %v2511_v2, %v594_v46  ;;  %v551_v37 = vadd.s32 %v519_v27, %v359_v8  ;;  %v522_v55 = vsel %vm490_vm3, 1, %v3402_v30 }
 0x16a   : > { %v904_v52 = vsel %vm872_vm4, 1, %v3402_v30  ;;  %v697_v53 = vsel %vm665_vm5, 1, %v3402_v30  ;;  %v744_v23 = vadd.s32 %v712_v29, %v552_v25  ;;  %v521_v4 = vsel %vm489_vm6, 1, %v3402_v30  ;;  %v3418_v25 = vld [vmem:[#allocation5_spill] sm:$0xff]  ;;  %v3419_v29 = vld [vmem:[#allocation6_spill] sm:$0xff] }
 0x16b   : > { %v743_v28 = vadd.s32 %v711_v61, %v551_v37  ;;  %v951_v12 = vcvt.s32.f32 %v919_v13  ;;  %v698_v56 = vsel %vm666_vm7, 1, %v3402_v30  ;;  %vm682_vm10 = vcmp.eq.s32.totalorder %v2511_v2, %v642_v59 }
 0x16c   : > { %v786_v5 = vpop.permute.xlu0 %785  ;;  %v936_v36 = vadd.s32 %v904_v52, %v744_v23  ;;  %v537_v58 = vadd.s32 %v505_v17, %v2814_v44  ;;  %v554_v51 = vadd.s32 %v522_v55, %v362_v3  ;;  %v730_v34 = vadd.s32 %v698_v56, %v538_v39  ;;  %v3421_v23 = vld [vmem:[#allocation8_spill] sm:$0xff]  ;;  %v3424_v56 = vld [vmem:[#allocation27_spill] sm:$0xff] }
 0x16d   : > { %vm858_vm9 = vcmp.eq.s32.totalorder %v2511_v2, %v786_v5  ;;  %vm681_vm13 = vcmp.eq.s32.totalorder %v2511_v2, %v3416_v20  ;;  %v553_v26 = vadd.s32 %v521_v4, %v361_v11  ;;  %v714_v46 = vsel %vm682_vm10, 1, %v3402_v30 }
 0x16e   : > { %v780_v0 = vpop.permute.xlu1 %779  ;;  %v890_v22 = vsel %vm858_vm9, 1, %v3402_v30  ;;  %v729_v45 = vadd.s32 %v697_v53, %v537_v58  ;;  %v968_v9 = vcvt.s32.f32 %v936_v36  ;;  %v713_v10 = vsel %vm681_vm13, 1, %v3402_v30  ;;  %v3420_v53 = vld [vmem:[#allocation7_spill] sm:$0xff] }
 0x16f   : > { %vm856_vm8 = vcmp.eq.s32.totalorder %v2511_v2, %v780_v0  ;;  %v922_v44 = vadd.s32 %v890_v22, %v730_v34  ;;  %v746_v8 = vadd.s32 %v714_v46, %v554_v51  ;;  %v745_v42 = vadd.s32 %v713_v10, %v553_v26  ;;  %v3425_v22 = vld [vmem:[#allocation16_spill] sm:$0xff] }
 0x170   : > { %v888_v14 = vsel %vm856_vm8, 1, %v3402_v30  ;;  %v834_v41 = vpop.permute.xlu0 %833  ;;  %vm316_vm2 = vcmp.eq.s32.totalorder %v2511_v2, %v3418_v25  ;;  %vm315_vm3 = vcmp.eq.s32.totalorder %v2511_v2, %v3419_v29  ;;  %vm318_vm5 = vcmp.eq.s32.totalorder %v2511_v2, %v3420_v53 }
 0x171   : > { %v920_v43 = vadd.s32 %v888_v14, %v728_v16  ;;  %vm874_vm12 = vcmp.eq.s32.totalorder %v2511_v2, %v834_v41  ;;  %v954_v31 = vcvt.s32.f32 %v922_v44  ;;  %v3417_v16 = vld [vmem:[#allocation23_spill] sm:$0xff]  ;;  %v348_v37 = vsel %vm316_vm2, 1, %v3402_v30 }
 0x172   : > { %v825_v62 = vpop.permute.xlu1 %824  ;;  %v906_v15 = vsel %vm874_vm12, 1, %v3402_v30  ;;  %vm476_vm0 = vcmp.eq.s32.totalorder %v2511_v2, %v3417_v16  ;;  %v347_v55 = vsel %vm315_vm3, 1, %v3402_v30  ;;  %vm317_vm6 = vcmp.eq.s32.totalorder %v2511_v2, %v3421_v23 }
 0x173   : > { %v952_v21 = vcvt.s32.f32 %v920_v43  ;;  %vm871_vm11 = vcmp.eq.s32.totalorder %v2511_v2, %v825_v62  ;;  %v938_v49 = vadd.s32 %v906_v15, %v746_v8  ;;  %v508_v0 = vsel %vm476_vm0, 1, %v3402_v30  ;;  %v3422_v43 = vld [vmem:[#allocation13_spill] sm:$0xff] }
 0x174   : > { %v903_v57 = vsel %vm871_vm11, 1, %v3402_v30  ;;  %v792_v52 = vpop.permute.xlu0 %791  ;;  %vm332_vm7 = vcmp.eq.s32.totalorder %v2511_v2, %v3422_v43  ;;  %v540_v4 = vadd.s32 %v508_v0, %v348_v37  ;;  %vm667_vm9 = vcmp.eq.s32.totalorder %v2511_v2, %v3424_v56  ;;  %v3428_v15 = vld [vmem:[#allocation25_spill] sm:$0xff] }
 0x175   : > { %v935_v54 = vadd.s32 %v903_v57, %v743_v28  ;;  %v979_v19 = vpack.c.bf16 %v952_v21, %v951_v12  ;;  %v970_v1 = vcvt.s32.f32 %v938_v49  ;;  %v3423_v12 = vld [vmem:[#allocation14_spill] sm:$0xff]  ;;  %vm860_vm10 = vcmp.eq.s32.totalorder %v2511_v2, %v792_v52  ;;  %v3426_v57 = vld [vmem:[#allocation24_spill] sm:$0xff] }
 0x176   : > { %v783_v24 = vpop.permute.xlu1 %782  ;;  %vm331_vm8 = vcmp.eq.s32.totalorder %v2511_v2, %v3423_v12  ;;  %v350_v36 = vsel %vm318_vm5, 1, %v3402_v30  ;;  %v349_v21 = vsel %vm317_vm6, 1, %v3402_v30  ;;  %v364_v58 = vsel %vm332_vm7, 1, %v3402_v30 }
 0x177   : > { %v967_v47 = vcvt.s32.f32 %v935_v54  ;;  %vm857_vm14 = vcmp.eq.s32.totalorder %v2511_v2, %v783_v24  ;;  %1721 = vmatprep.mubr.bf16.mxu0 %v979_v19  ;;  %v363_v51 = vsel %vm331_vm8, 1, %v3402_v30  ;;  %vm333_vm13 = vcmp.eq.s32.totalorder %v2511_v2, %v3425_v22  ;;  %v3427_v24 = vld [vmem:[#allocation15_spill] sm:$0xff] }
 0x178   : > { %v889_v38 = vsel %vm857_vm14, 1, %v3402_v30  ;;  %vm477_vm14 = vcmp.eq.s32.totalorder %v2511_v2, %v3426_v57  ;;  %v699_v34 = vsel %vm667_vm9, 1, %v3402_v30  ;;  %v892_v54 = vsel %vm860_vm10, 1, %v3402_v30  ;;  %v795_v10 = vpop.permute.xlu0 %794 }
 0x179   : > { %v921_v32 = vadd.s32 %v889_v38, %v729_v45  ;;  %v987_v50 = vpack.c.bf16 %v968_v9, %v967_v47  ;;  %vm334_vm2 = vcmp.eq.s32.totalorder %v2511_v2, %v3427_v24  ;;  %v365_v9 = vsel %vm333_vm13, 1, %v3402_v30  ;;  %v3429_v38 = vld [vmem:[#allocation28_spill] sm:$0xff] }
 0x17a   : > { %v831_v3 = vpop.permute.xlu1 %830  ;;  %v509_v47 = vsel %vm477_vm14, 1, %v3402_v30  ;;  %vm684_vm5 = vcmp.eq.s32.totalorder %v2511_v2, %v3429_v38  ;;  %vm670_vm9 = vcmp.eq.s32.totalorder %v2511_v2, %v2635_v63  ;;  %vm861_vm10 = vcmp.eq.s32.totalorder %v2511_v2, %v795_v10 }
 0x17b   : > { %v953_v59 = vcvt.s32.f32 %v921_v32  ;;  %vm873_vm15 = vcmp.eq.s32.totalorder %v2511_v2, %v831_v3  ;;  %1737 = vmatprep.mubr.bf16.mxu1 %v987_v50  ;;  %v366_v25 = vsel %vm334_vm2, 1, %v3402_v30  ;;  %v702_v0 = vsel %vm670_vm9, 1, %v3402_v30 }
 0x17c   : > { %v905_v11 = vsel %vm873_vm15, 1, %v3402_v30 }
 0x17d   : > { %v937_v33 = vadd.s32 %v905_v11, %v745_v42  ;;  %v980_v60 = vpack.c.bf16 %v954_v31, %v953_v59 }
 0x17f   : > { %v969_v35 = vcvt.s32.f32 %v937_v33  ;;  %v405_v7 = vpop.permute.xlu1 %404  ;;  %1722 = vmatmul.mubr.bf16.gmra.mxu0 %v980_v60  ;;  %v541_v33 = vadd.s32 %v509_v47, %v349_v21 }
 0x180   : > { %vm475_vm1 = vcmp.eq.s32.totalorder %v2511_v2, %v405_v7 }
 0x181   : > { %v988_v40 = vpack.c.bf16 %v970_v1, %v969_v35  ;;  %v507_v61 = vsel %vm475_vm1, 1, %v3402_v30  ;;  %v716_v35 = vsel %vm684_vm5, 1, %v3402_v30 }
 0x182   : > { %v539_v41 = vadd.s32 %v507_v61, %v347_v55  ;;  %v893_v61 = vsel %vm861_vm10, 1, %v3402_v30 }
 0x183   : > { %v453_v17 = vpop.permute.xlu1 %452  ;;  %1738 = vmatmul.mubr.bf16.gmra.mxu1 %v988_v40 }
 0x184   : > { %vm491_vm11 = vcmp.eq.s32.totalorder %v2511_v2, %v453_v17  ;;  %v731_v26 = vadd.s32 %v699_v34, %v539_v41 }
 0x185   : > { %v523_v19 = vsel %vm491_vm11, 1, %v3402_v30 }
 0x186   : > { %v555_v32 = vadd.s32 %v523_v19, %v363_v51 }
 0x187   : > { %v456_v39 = vpop.permute.xlu1 %455 }
 0x188   : > { %vm492_vm12 = vcmp.eq.s32.totalorder %v2511_v2, %v456_v39 }
 0x189   : > { %v524_v45 = vsel %vm492_vm12, 1, %v3402_v30  ;;  %vm686_vm12 = vcmp.eq.s32.totalorder %v2511_v2, %v2658_v48 }
 0x18a   : > { %v556_v50 = vadd.s32 %v524_v45, %v364_v58  ;;  %v718_v48 = vsel %vm686_vm12, 1, %v3402_v30 }
 0x18b   : > { %v414_v6 = vpop.permute.xlu1 %413 }
 0x18c   : > { %vm478_vm15 = vcmp.eq.s32.totalorder %v2511_v2, %v414_v6  ;;  %v748_v16 = vadd.s32 %v716_v35, %v556_v50 }
 0x18d   : > { %v510_v3 = vsel %vm478_vm15, 1, %v3402_v30 }
 0x18e   : > { %v542_v17 = vadd.s32 %v510_v3, %v350_v36 }
 0x18f   : > { %v2891_v5 = vpop.permute.xlu1 %461 }
 0x190   : > { %vm494_vm7 = vcmp.eq.s32.totalorder %v2511_v2, %v2891_v5  ;;  %v843_v5 = vpop.permute.xlu0 %842  ;;  %v734_v53 = vadd.s32 %v702_v0, %v542_v17 }
 0x191   : > { %vm877_vm13 = vcmp.eq.s32.totalorder %v2511_v2, %v843_v5 }
 0x192   : > { %v909_v41 = vsel %vm877_vm13, 1, %v3402_v30 }
 0x194   : > { %v600_v27 = vpop.permute.xlu1 %599 }
 0x195   : > { %vm668_vm4 = vcmp.eq.s32.totalorder %v2511_v2, %v600_v27  ;;  %v526_v27 = vsel %vm494_vm7, 1, %v3402_v30 }
 0x196   : > { %v700_v14 = vsel %vm668_vm4, 1, %v3402_v30  ;;  %vm493_vm4 = vcmp.eq.s32.totalorder %v2511_v2, %v3428_v15  ;;  %v558_v55 = vadd.s32 %v526_v27, %v366_v25 }
 0x197   : > { %v732_v62 = vadd.s32 %v700_v14, %v540_v4  ;;  %v525_v60 = vsel %vm493_vm4, 1, %v3402_v30 }
 0x198   : > { %v645_v18 = vpop.permute.xlu1 %644  ;;  %v557_v29 = vadd.s32 %v525_v60, %v365_v9  ;;  %v750_v36 = vadd.s32 %v718_v48, %v558_v55 }
 0x199   : > { %v924_v46 = vadd.s32 %v892_v54, %v732_v62  ;;  %vm683_vm0 = vcmp.eq.s32.totalorder %v2511_v2, %v645_v18 }
 0x19a   : > { %v715_v42 = vsel %vm683_vm0, 1, %v3402_v30 }
 0x19b   : > { %v956_v49 = vcvt.s32.f32 %v924_v46  ;;  %v747_v7 = vadd.s32 %v715_v42, %v555_v32 }
 0x19c   : > { %v603_v13 = vpop.permute.xlu1 %602 }
 0x19d   : > { %vm669_vm3 = vcmp.eq.s32.totalorder %v2511_v2, %v603_v13 }
 0x19e   : > { %v701_v59 = vsel %vm669_vm3, 1, %v3402_v30 }
 0x19f   : > { %v733_v39 = vadd.s32 %v701_v59, %v541_v33 }
 0x1a0   : > { %v2912_v28 = vpop.permute.xlu1 %650 }
 0x1a1   : > { %vm685_vm8 = vcmp.eq.s32.totalorder %v2511_v2, %v2912_v28  ;;  %v925_v52 = vadd.s32 %v893_v61, %v733_v39 }
 0x1a2   : > { %v717_v63 = vsel %vm685_vm8, 1, %v3402_v30 }
 0x1a3   : > { %v749_v23 = vadd.s32 %v717_v63, %v557_v29  ;;  %v957_v21 = vcvt.s32.f32 %v925_v52 }
 0x1a5   : > { %v789_v20 = vpop.permute.xlu1 %788  ;;  %v941_v58 = vadd.s32 %v909_v41, %v749_v23 }
 0x1a6   : > { %vm859_vm1 = vcmp.eq.s32.totalorder %v2511_v2, %v789_v20  ;;  %v2987_v20 = vld [vmem:[%s3367_s2] ss:$0 sm:$0xff] }
 0x1a7   : > { %v891_v44 = vsel %vm859_vm1, 1, %v3402_v30  ;;  %v973_v54 = vcvt.s32.f32 %v941_v58 }
 0x1a8   : > { %v923_v8 = vadd.s32 %v891_v44, %v731_v26 }
 0x1a9   : > { %v837_v31 = vpop.permute.xlu1 %836 }
 0x1aa   : > { %v955_v11 = vcvt.s32.f32 %v923_v8  ;;  %vm875_vm6 = vcmp.eq.s32.totalorder %v2511_v2, %v837_v31 }
 0x1ab   : > { %v907_v1 = vsel %vm875_vm6, 1, %v3402_v30 }
 0x1ac   : > { %v981_v40 = vpack.c.bf16 %v956_v49, %v955_v11  ;;  %v939_v18 = vadd.s32 %v907_v1, %v747_v7 }
 0x1ad   : > { %v840_v6 = vpop.permute.xlu1 %839 }
 0x1ae   : > { %vm876_vm11 = vcmp.eq.s32.totalorder %v2511_v2, %v840_v6  ;;  %1725 = vmatprep.mubr.bf16.mxu0 %v981_v40  ;;  %v971_v43 = vcvt.s32.f32 %v939_v18 }
 0x1af   : > { %v908_v13 = vsel %vm876_vm11, 1, %v3402_v30 }
 0x1b0   : > { %v940_v37 = vadd.s32 %v908_v13, %v748_v16 }
 0x1b1   : > { %v798_v14 = vpop.permute.xlu1 %797 }
 0x1b2   : > { %v972_v4 = vcvt.s32.f32 %v940_v37  ;;  %vm862_vm14 = vcmp.eq.s32.totalorder %v2511_v2, %v798_v14 }
 0x1b3   : > { %v894_v28 = vsel %vm862_vm14, 1, %v3402_v30 }
 0x1b4   : > { %v926_v12 = vadd.s32 %v894_v28, %v734_v53  ;;  %v989_v56 = vpack.c.bf16 %v972_v4, %v971_v43 }
 0x1b5   : > { %v846_v62 = vpop.permute.xlu1 %845 }
 0x1b6   : > { %v958_v51 = vcvt.s32.f32 %v926_v12  ;;  %vm878_vm15 = vcmp.eq.s32.totalorder %v2511_v2, %v846_v62  ;;  %1741 = vmatprep.mubr.bf16.mxu1 %v989_v56 }
 0x1b7   : > { %v910_v22 = vsel %vm878_vm15, 1, %v3402_v30 }
 0x1b8   : > { %v942_v57 = vadd.s32 %v910_v22, %v750_v36  ;;  %v982_v34 = vpack.c.bf16 %v958_v51, %v957_v21 }
 0x1ba   : > { %v974_v19 = vcvt.s32.f32 %v942_v57  ;;  %1726 = vmatmul.mubr.bf16.gmra.mxu0 %v982_v34 }
 0x1bc   : > { %v990_v45 = vpack.c.bf16 %v974_v19, %v973_v54 }
 0x1be   : > { %1742 = vmatmul.mubr.bf16.gmra.mxu1 %v990_v45 }
 0x219   : > { %v1715_v26 = vpop.f32.mrf.mxu0 }
 0x21a   : > { %v2990_v46 = vadd.f32 %v1715_v26, %v2987_v20 }
 0x21b   : > { %v1096_v2 = vpop.f32.mrf.mxu0 }
 0x21c   : > { %1227 = vmax.xlane.f32.xlu0 %v2990_v46  ;;  %v2994_v24 = vadd.f32 %v2987_v20, %v1096_v2 }
 0x21d   : > { %v1731_v30 = vpop.f32.mrf.mxu1  ;;  %v1716_v44 = vpop.f32.mrf.mxu0 }
 0x21e   : > { %v2997_v9 = vadd.f32 %v1731_v30, %v2987_v20  ;;  %v3002_v15 = vadd.f32 %v1716_v44, %v2987_v20 }
 0x21f   : > { %v1160_v47 = vpop.f32.mrf.mxu1  ;;  %v1099_v10 = vpop.f32.mrf.mxu0 }
 0x220   : > { %1223 = vmax.xlane.f32.xlu0 %v2994_v24  ;;  %1259 = vmax.xlane.f32.xlu1 %v2997_v9  ;;  %v3005_v38 = vadd.f32 %v2987_v20, %v1160_v47  ;;  %v3010_v50 = vadd.f32 %v2987_v20, %v1099_v10 }
 0x221   : > { %v1732_v8 = vpop.f32.mrf.mxu1 }
 0x222   : > { %v3013_v3 = vadd.f32 %v1732_v8, %v2987_v20 }
 0x223   : > { %v1163_v42 = vpop.f32.mrf.mxu1 }
 0x224   : > { %1229 = vmax.xlane.f32.xlu0 %v3002_v15  ;;  %1255 = vmax.xlane.f32.xlu1 %v3005_v38  ;;  %v3018_v59 = vadd.f32 %v2987_v20, %v1163_v42 }
 0x225   : > { %v1719_v32 = vpop.f32.mrf.mxu0 }
 0x226   : > { %v3021_v11 = vadd.f32 %v1719_v32, %v2987_v20 }
 0x227   : > { %v1112_v31 = vpop.f32.mrf.mxu0 }
 0x228   : > { %1261 = vmax.xlane.f32.xlu0 %v3013_v3  ;;  %1225 = vmax.xlane.f32.xlu1 %v3010_v50  ;;  %v3034_v40 = vadd.f32 %v2987_v20, %v1112_v31 }
 0x229   : > { %v1735_v49 = vpop.f32.mrf.mxu1  ;;  %v1720_v33 = vpop.f32.mrf.mxu0 }
 0x22a   : > { %v3026_v1 = vadd.f32 %v1720_v33, %v2987_v20  ;;  %v3029_v35 = vadd.f32 %v1735_v49, %v2987_v20 }
 0x22b   : > { %v1176_v60 = vpop.f32.mrf.mxu1  ;;  %v1115_v39 = vpop.f32.mrf.mxu0 }
 0x22c   : > { %1257 = vmax.xlane.f32.xlu0 %v3018_v59  ;;  %1235 = vmax.xlane.f32.xlu1 %v3021_v11  ;;  %v3042_v6 = vadd.f32 %v2987_v20, %v1115_v39  ;;  %v3045_v5 = vadd.f32 %v2987_v20, %v1176_v60 }
 0x22d   : > { %v1736_v7 = vpop.f32.mrf.mxu1 }
 0x22e   : > { %v3037_v17 = vadd.f32 %v1736_v7, %v2987_v20 }
 0x22f   : > { %v1179_v27 = vpop.f32.mrf.mxu1 }
 0x230   : > { %1237 = vmax.xlane.f32.xlu0 %v3026_v1  ;;  %1267 = vmax.xlane.f32.xlu1 %v3029_v35  ;;  %v3050_v18 = vadd.f32 %v2987_v20, %v1179_v27 }
 0x234   : > { %1231 = vmax.xlane.f32.xlu1 %v3034_v40  ;;  %1269 = vmax.xlane.f32.xlu0 %v3037_v17 }
 0x238   : > { %1233 = vmax.xlane.f32.xlu0 %v3042_v6  ;;  %1263 = vmax.xlane.f32.xlu1 %v3045_v5 }
 0x23c   : > { %1265 = vmax.xlane.f32.xlu0 %v3050_v18 }
 0x23f   : > { %v1723_v16 = vpop.f32.mrf.mxu0 }
 0x240   : > { %v3054_v25 = vadd.f32 %v1723_v16, %v2987_v20 }
 0x241   : > { %v1128_v29 = vpop.f32.mrf.mxu0 }
 0x242   : > { %1243 = vmax.xlane.f32.xlu1 %v3054_v25  ;;  %v3066_v52 = vadd.f32 %v2987_v20, %v1128_v29 }
 0x243   : > { %v1724_v63 = vpop.f32.mrf.mxu0  ;;  %v1739_v13 = vpop.f32.mrf.mxu1 }
 0x244   : > { %v3058_v0 = vadd.f32 %v1724_v63, %v2987_v20  ;;  %v3061_v61 = vadd.f32 %v1739_v13, %v2987_v20 }
 0x245   : > { %v1192_v37 = vpop.f32.mrf.mxu1  ;;  %v1131_v53 = vpop.f32.mrf.mxu0 }
 0x246   : > { %1245 = vmax.xlane.f32.xlu0 %v3058_v0  ;;  %1275 = vmax.xlane.f32.xlu1 %v3061_v61  ;;  %v3074_v23 = vadd.f32 %v2987_v20, %v1131_v53  ;;  %v3077_v43 = vadd.f32 %v2987_v20, %v1192_v37 }
 0x247   : > { %v1740_v55 = vpop.f32.mrf.mxu1 }
 0x248   : > { %v3069_v14 = vadd.f32 %v1740_v55, %v2987_v20 }
 0x249   : > { %v1195_v4 = vpop.f32.mrf.mxu1 }
 0x24a   : > { %1239 = vmax.xlane.f32.xlu1 %v3066_v52  ;;  %1277 = vmax.xlane.f32.xlu0 %v3069_v14  ;;  %v3082_v28 = vadd.f32 %v2987_v20, %v1195_v4 }
 0x24e   : > { %1241 = vmax.xlane.f32.xlu0 %v3074_v23  ;;  %1271 = vmax.xlane.f32.xlu1 %v3077_v43 }
 0x252   : > { %1273 = vmax.xlane.f32.xlu0 %v3082_v28 }
 0x27a   : > { %v1727_v48 = vpop.f32.mrf.mxu0 }
 0x27b   : > { %v3086_v12 = vadd.f32 %v1727_v48, %v2987_v20 }
 0x27c   : > { %v1144_v56 = vpop.f32.mrf.mxu0 }
 0x27d   : > { %1251 = vmax.xlane.f32.xlu1 %v3086_v12  ;;  %v3090_v36 = vadd.f32 %v2987_v20, %v1144_v56 }
 0x27e   : > { %v1728_v41 = vpop.f32.mrf.mxu0  ;;  %v1743_v62 = vpop.f32.mrf.mxu1 }
 0x27f   : > { %v3093_v21 = vadd.f32 %v1728_v41, %v2987_v20  ;;  %v3106_v19 = vadd.f32 %v1743_v62, %v2987_v20 }
 0x280   : > { %v1147_v58 = vpop.f32.mrf.mxu0  ;;  %v1208_v51 = vpop.f32.mrf.mxu1 }
 0x281   : > { %1253 = vmax.xlane.f32.xlu0 %v3093_v21  ;;  %1247 = vmax.xlane.f32.xlu1 %v3090_v36  ;;  %v3098_v57 = vadd.f32 %v2987_v20, %v1147_v58  ;;  %v3101_v34 = vadd.f32 %v2987_v20, %v1208_v51 }
 0x282   : > { %v1744_v22 = vpop.f32.mrf.mxu1 }
 0x283   : > { %v3114_v26 = vadd.f32 %v1744_v22, %v2987_v20 }
 0x284   : > { %v1211_v54 = vpop.f32.mrf.mxu1 }
 0x285   : > { %1249 = vmax.xlane.f32.xlu0 %v3098_v57  ;;  %1279 = vmax.xlane.f32.xlu1 %v3101_v34  ;;  %v3109_v45 = vadd.f32 %v2987_v20, %v1211_v54 }
 0x289   : > { %1281 = vmax.xlane.f32.xlu0 %v3109_v45  ;;  %1283 = vmax.xlane.f32.xlu1 %v3106_v19 }
 0x28d   : > { %1285 = vmax.xlane.f32.xlu0 %v3114_v26 }
 0x2a5   : > { %v1228_v2 = vpop.xlane.xlu0 %1227 }
 0x2a6   : > { %v3118_v30 = vsub.f32 %v2990_v46, %v1228_v2 }
 0x2a8   : > { %v1323_v44 = vmul.f32 1.442695, %v3118_v30 }
 0x2a9   : > { %v1260_v47 = vpop.xlane.xlu1 %1259  ;;  %v1224_v10 = vpop.xlane.xlu0 %1223 }
 0x2aa   : > { %1831 = vpow2.f32 %v1323_v44  ;;  %v3122_v8 = vsub.f32 %v2997_v9, %v1260_v47  ;;  %v3125_v32 = vsub.f32 %v2994_v24, %v1224_v10 }
 0x2ac   : > { %v1355_v20 = vmul.f32 1.442695, %v3122_v8  ;;  %v1319_v49 = vmul.f32 1.442695, %v3125_v32 }
 0x2ad   : > { %v1256_v42 = vpop.xlane.xlu1 %1255  ;;  %v1230_v31 = vpop.xlane.xlu0 %1229 }
 0x2ae   : > { %1833 = vpow2.f32 %v1355_v20  ;;  %v3130_v46 = vsub.f32 %v3005_v38, %v1256_v42  ;;  %v3133_v33 = vsub.f32 %v3002_v15, %v1230_v31 }
 0x2af   : > { %1835 = vpow2.f32 %v1319_v49 }
 0x2b0   : > { %v1325_v60 = vmul.f32 1.442695, %v3133_v33  ;;  %v1351_v24 = vmul.f32 1.442695, %v3130_v46 }
 0x2b1   : > { %v1226_v9 = vpop.xlane.xlu1 %1225  ;;  %v1262_v7 = vpop.xlane.xlu0 %1261 }
 0x2b2   : > { %v3138_v39 = vsub.f32 %v3013_v3, %v1262_v7  ;;  %1837 = vpow2.f32 %v1325_v60  ;;  %v3141_v27 = vsub.f32 %v3010_v50, %v1226_v9 }
 0x2b3   : > { %1839 = vpow2.f32 %v1351_v24 }
 0x2b4   : > { %v1357_v38 = vmul.f32 1.442695, %v3138_v39  ;;  %v1321_v13 = vmul.f32 1.442695, %v3141_v27 }
 0x2b5   : > { %v1236_v16 = vpop.xlane.xlu1 %1235  ;;  %v1258_v29 = vpop.xlane.xlu0 %1257 }
 0x2b6   : > { %v3145_v15 = vsub.f32 %v3021_v11, %v1236_v16  ;;  %1841 = vpow2.f32 %v1357_v38  ;;  %v3149_v37 = vsub.f32 %v3018_v59, %v1258_v29 }
 0x2b7   : > { %v1832_v63 = vpop.eup %1831 }
 0x2b8   : > { %v1331_v3 = vmul.f32 1.442695, %v3145_v15  ;;  %1387 = vadd.xlane.f32.xlu1 %v1832_v63  ;;  %v1353_v11 = vmul.f32 1.442695, %v3149_v37 }
 0x2b9   : > { %v1268_v50 = vpop.xlane.xlu1 %1267  ;;  %v1238_v55 = vpop.xlane.xlu0 %1237 }
 0x2ba   : > { %1843 = vpow2.f32 %v1331_v3  ;;  %v3153_v53 = vsub.f32 %v3029_v35, %v1268_v50  ;;  %v3157_v48 = vsub.f32 %v3026_v1, %v1238_v55 }
 0x2bb   : > { %v1834_v4 = vpop.eup %1833  ;;  %1845 = vpow2.f32 %v1321_v13 }
 0x2bc   : > { %v1363_v56 = vmul.f32 1.442695, %v3153_v53  ;;  %1419 = vadd.xlane.f32.xlu1 %v1834_v4  ;;  %v1836_v58 = vpop.eup %1835  ;;  %v1333_v35 = vmul.f32 1.442695, %v3157_v48 }
 0x2bd   : > { %v1232_v59 = vpop.xlane.xlu1 %1231  ;;  %v1270_v41 = vpop.xlane.xlu0 %1269 }
 0x2be   : > { %1847 = vpow2.f32 %v1363_v56  ;;  %v3161_v62 = vsub.f32 %v3034_v40, %v1232_v59  ;;  %v3165_v51 = vsub.f32 %v3037_v17, %v1270_v41 }
 0x2bf   : > { %1849 = vpow2.f32 %v1353_v11  ;;  %v1838_v22 = vpop.eup %1837 }
 0x2c0   : > { %v1327_v1 = vmul.f32 1.442695, %v3161_v62  ;;  %1383 = vadd.xlane.f32.xlu1 %v1836_v58  ;;  %1389 = vadd.xlane.f32.xlu0 %v1838_v22  ;;  %v1840_v40 = vpop.eup %1839  ;;  %v1365_v47 = vmul.f32 1.442695, %v3165_v51 }
 0x2c1   : > { %v1264_v54 = vpop.xlane.xlu1 %1263  ;;  %v1234_v2 = vpop.xlane.xlu0 %1233 }
 0x2c2   : > { %1851 = vpow2.f32 %v1327_v1  ;;  %v3169_v44 = vsub.f32 %v3045_v5, %v1264_v54  ;;  %v3173_v10 = vsub.f32 %v3042_v6, %v1234_v2 }
 0x2c3   : > { %1853 = vpow2.f32 %v1333_v35  ;;  %v1842_v17 = vpop.eup %1841 }
 0x2c4   : > { %v1359_v20 = vmul.f32 1.442695, %v3169_v44  ;;  %1415 = vadd.xlane.f32.xlu1 %v1840_v40  ;;  %1421 = vadd.xlane.f32.xlu0 %v1842_v17  ;;  %v1329_v49 = vmul.f32 1.442695, %v3173_v10 }
 0x2c5   : > { %v1266_v42 = vpop.xlane.xlu0 %1265 }
 0x2c6   : > { %1855 = vpow2.f32 %v1359_v20  ;;  %v3178_v5 = vsub.f32 %v3050_v18, %v1266_v42 }
 0x2c7   : > { %v1844_v31 = vpop.eup %1843  ;;  %1857 = vpow2.f32 %v1365_v47 }
 0x2c8   : > { %v1846_v60 = vpop.eup %1845  ;;  %1395 = vadd.xlane.f32.xlu1 %v1844_v31  ;;  %1859 = vpow2.f32 %v1329_v49  ;;  %v1361_v6 = vmul.f32 1.442695, %v3178_v5 }
 0x2c9   : > { %1385 = vadd.xlane.f32.xlu0 %v1846_v60 }
 0x2ca   : > { %1861 = vpow2.f32 %v1361_v6 }
 0x2cb   : > { %v1848_v9 = vpop.eup %1847  ;;  %v1244_v7 = vpop.xlane.xlu1 %1243 }
 0x2cc   : > { %v1850_v24 = vpop.eup %1849  ;;  %v3182_v38 = vsub.f32 %v3054_v25, %v1244_v7  ;;  %1427 = vadd.xlane.f32.xlu1 %v1848_v9 }
 0x2cd   : > { %1417 = vadd.xlane.f32.xlu0 %v1850_v24 }
 0x2ce   : > { %v1339_v16 = vmul.f32 1.442695, %v3182_v38 }
 0x2cf   : > { %v1852_v29 = vpop.eup %1851  ;;  %v1276_v18 = vpop.xlane.xlu1 %1275 }
 0x2d0   : > { %v1246_v63 = vpop.xlane.xlu0 %1245  ;;  %v1854_v13 = vpop.eup %1853  ;;  %1863 = vpow2.f32 %v1339_v16  ;;  %v3186_v3 = vsub.f32 %v3061_v61, %v1276_v18  ;;  %1391 = vadd.xlane.f32.xlu1 %v1852_v29 }
 0x2d1   : > { %v3189_v50 = vsub.f32 %v3058_v0, %v1246_v63  ;;  %1397 = vadd.xlane.f32.xlu0 %v1854_v13 }
 0x2d2   : > { %v1371_v25 = vmul.f32 1.442695, %v3186_v3 }
 0x2d3   : > { %v1341_v55 = vmul.f32 1.442695, %v3189_v50  ;;  %v1856_v4 = vpop.eup %1855  ;;  %v1240_v11 = vpop.xlane.xlu1 %1239 }
 0x2d4   : > { %v1278_v56 = vpop.xlane.xlu0 %1277  ;;  %v1858_v59 = vpop.eup %1857  ;;  %1865 = vpow2.f32 %v1371_v25  ;;  %v3194_v41 = vsub.f32 %v3066_v52, %v1240_v11  ;;  %1423 = vadd.xlane.f32.xlu1 %v1856_v4 }
 0x2d5   : > { %v3197_v61 = vsub.f32 %v3069_v14, %v1278_v56  ;;  %1867 = vpow2.f32 %v1341_v55  ;;  %1429 = vadd.xlane.f32.xlu0 %v1858_v59  ;;  %v1860_v1 = vpop.eup %1859 }
 0x2d6   : > { %v1335_v0 = vmul.f32 1.442695, %v3194_v41 }
 0x2d7   : > { %v1373_v58 = vmul.f32 1.442695, %v3197_v61  ;;  %v1272_v35 = vpop.xlane.xlu1 %1271  ;;  %v1862_v47 = vpop.eup %1861 }
 0x2d8   : > { %v1242_v22 = vpop.xlane.xlu0 %1241  ;;  %1869 = vpow2.f32 %v1335_v0  ;;  %v3202_v54 = vsub.f32 %v3077_v43, %v1272_v35 }
 0x2d9   : > { %v3205_v52 = vsub.f32 %v3074_v23, %v1242_v22  ;;  %1871 = vpow2.f32 %v1373_v58  ;;  %1393 = vadd.xlane.f32.xlu0 %v1860_v1 }
 0x2da   : > { %v1367_v14 = vmul.f32 1.442695, %v3202_v54 }
 0x2db   : > { %v1337_v2 = vmul.f32 1.442695, %v3205_v52 }
 0x2dc   : > { %v1274_v40 = vpop.xlane.xlu0 %1273  ;;  %1873 = vpow2.f32 %v1367_v14 }
 0x2dd   : > { %v3210_v17 = vsub.f32 %v3082_v28, %v1274_v40  ;;  %v1864_v20 = vpop.eup %1863  ;;  %1875 = vpow2.f32 %v1337_v2  ;;  %1425 = vadd.xlane.f32.xlu0 %v1862_v47 }
 0x2de   : > { %1403 = vadd.xlane.f32.xlu1 %v1864_v20 }
 0x2df   : > { %v1369_v43 = vmul.f32 1.442695, %v3210_v17 }
 0x2e1   : > { %1877 = vpow2.f32 %v1369_v43  ;;  %v1866_v23 = vpop.eup %1865 }
 0x2e2   : > { %v1868_v42 = vpop.eup %1867  ;;  %1435 = vadd.xlane.f32.xlu1 %v1866_v23 }
 0x2e3   : > { %1405 = vadd.xlane.f32.xlu0 %v1868_v42 }
 0x2e5   : > { %v1870_v31 = vpop.eup %1869 }
 0x2e6   : > { %v1872_v49 = vpop.eup %1871  ;;  %1399 = vadd.xlane.f32.xlu1 %v1870_v31 }
 0x2e7   : > { %1437 = vadd.xlane.f32.xlu0 %v1872_v49 }
 0x2e9   : > { %v1874_v60 = vpop.eup %1873 }
 0x2ea   : > { %v1876_v9 = vpop.eup %1875  ;;  %1431 = vadd.xlane.f32.xlu1 %v1874_v60 }
 0x2eb   : > { %1401 = vadd.xlane.f32.xlu0 %v1876_v9 }
 0x2ee   : > { %v1878_v28 = vpop.eup %1877 }
 0x2ef   : > { %1433 = vadd.xlane.f32.xlu0 %v1878_v28 }
 0x306   : > { %v1252_v6 = vpop.xlane.xlu1 %1251 }
 0x307   : > { %v3214_v7 = vsub.f32 %v3086_v12, %v1252_v6 }
 0x309   : > { %v1347_v24 = vmul.f32 1.442695, %v3214_v7 }
 0x30a   : > { %v1248_v16 = vpop.xlane.xlu1 %1247  ;;  %v1254_v29 = vpop.xlane.xlu0 %1253 }
 0x30b   : > { %1879 = vpow2.f32 %v1347_v24  ;;  %v3218_v18 = vsub.f32 %v3090_v36, %v1248_v16  ;;  %v3221_v63 = vsub.f32 %v3093_v21, %v1254_v29 }
 0x30d   : > { %v1343_v13 = vmul.f32 1.442695, %v3218_v18  ;;  %v1349_v25 = vmul.f32 1.442695, %v3221_v63 }
 0x30e   : > { %v1280_v55 = vpop.xlane.xlu1 %1279  ;;  %v1250_v4 = vpop.xlane.xlu0 %1249 }
 0x30f   : > { %1881 = vpow2.f32 %v1343_v13  ;;  %v3226_v12 = vsub.f32 %v3101_v34, %v1280_v55  ;;  %v3229_v11 = vsub.f32 %v3098_v57, %v1250_v4 }
 0x310   : > { %1883 = vpow2.f32 %v1349_v25 }
 0x311   : > { %v1375_v36 = vmul.f32 1.442695, %v3226_v12  ;;  %v1345_v56 = vmul.f32 1.442695, %v3229_v11 }
 0x312   : > { %v1284_v21 = vpop.xlane.xlu1 %1283  ;;  %v1282_v59 = vpop.xlane.xlu0 %1281 }
 0x313   : > { %1885 = vpow2.f32 %v1375_v36  ;;  %v3234_v0 = vsub.f32 %v3106_v19, %v1284_v21  ;;  %v3237_v58 = vsub.f32 %v3109_v45, %v1282_v59 }
 0x314   : > { %1887 = vpow2.f32 %v1345_v56 }
 0x315   : > { %v1379_v34 = vmul.f32 1.442695, %v3234_v0  ;;  %v1377_v57 = vmul.f32 1.442695, %v3237_v58 }
 0x316   : > { %v1286_v35 = vpop.xlane.xlu0 %1285 }
 0x317   : > { %1889 = vpow2.f32 %v1379_v34  ;;  %v3242_v22 = vsub.f32 %v3114_v26, %v1286_v35 }
 0x318   : > { %v1880_v1 = vpop.eup %1879  ;;  %1891 = vpow2.f32 %v1377_v57 }
 0x319   : > { %v1381_v14 = vmul.f32 1.442695, %v3242_v22  ;;  %1411 = vadd.xlane.f32.xlu1 %v1880_v1 }
 0x31b   : > { %1893 = vpow2.f32 %v1381_v14 }
 0x31c   : > { %v1882_v19 = vpop.eup %1881 }
 0x31d   : > { %v1884_v2 = vpop.eup %1883  ;;  %1407 = vadd.xlane.f32.xlu1 %v1882_v19 }
 0x31e   : > { %1413 = vadd.xlane.f32.xlu0 %v1884_v2 }
 0x320   : > { %v1886_v45 = vpop.eup %1885 }
 0x321   : > { %v1888_v40 = vpop.eup %1887  ;;  %1439 = vadd.xlane.f32.xlu1 %v1886_v45 }
 0x322   : > { %1409 = vadd.xlane.f32.xlu0 %v1888_v40 }
 0x324   : > { %v1890_v47 = vpop.eup %1889 }
 0x325   : > { %v1892_v20 = vpop.eup %1891  ;;  %1443 = vadd.xlane.f32.xlu1 %v1890_v47 }
 0x326   : > { %1441 = vadd.xlane.f32.xlu0 %v1892_v20 }
 0x328   : > { %v1894_v26 = vpop.eup %1893 }
 0x32a   : > { %1445 = vadd.xlane.f32.xlu0 %v1894_v26 }
 0x341   : > { %v1388_v43 = vpop.xlane.xlu1 %1387 }
 0x342   : > { %1895 = vlog2.f32 %v1388_v43 }
 0x345   : > { %v1420_v23 = vpop.xlane.xlu1 %1419 }
 0x346   : > { %1897 = vlog2.f32 %v1420_v23 }
 0x349   : > { %v1384_v42 = vpop.xlane.xlu1 %1383  ;;  %v1390_v31 = vpop.xlane.xlu0 %1389 }
 0x34a   : > { %1899 = vlog2.f32 %v1384_v42 }
 0x34b   : > { %1901 = vlog2.f32 %v1390_v31 }
 0x34d   : > { %v1416_v49 = vpop.xlane.xlu1 %1415  ;;  %v1422_v60 = vpop.xlane.xlu0 %1421 }
 0x34e   : > { %1903 = vlog2.f32 %v1416_v49 }
 0x34f   : > { %v1896_v9 = vpop.eup %1895  ;;  %1905 = vlog2.f32 %v1422_v60 }
 0x350   : > { %v1452_v28 = vmul.f32 0.6931472, %v1896_v9 }
 0x351   : > { %v1396_v6 = vpop.xlane.xlu1 %1395 }
 0x352   : > { %v1513_v24 = vsub.f32 %v3118_v30, %v1452_v28  ;;  %1907 = vlog2.f32 %v1396_v6  ;;  %v1386_v16 = vpop.xlane.xlu0 %1385 }
 0x353   : > { %v1898_v29 = vpop.eup %1897  ;;  %1909 = vlog2.f32 %v1386_v16 }
 0x354   : > { %1545 = vst [vmem:[%s3249_s4 + $0x10] sm:$0xff] %v1513_v24  ;;  %v1484_v13 = vmul.f32 0.6931472, %v1898_v29 }
 0x355   : > { %v1428_v25 = vpop.xlane.xlu1 %1427 }
 0x356   : > { %v1529_v55 = vsub.f32 %v3122_v8, %v1484_v13  ;;  %1911 = vlog2.f32 %v1428_v25  ;;  %v1418_v4 = vpop.xlane.xlu0 %1417 }
 0x357   : > { %v1900_v36 = vpop.eup %1899  ;;  %1913 = vlog2.f32 %v1418_v4 }
 0x358   : > { %v1902_v30 = vpop.eup %1901  ;;  %1561 = vst [vmem:[%s3249_s4 + $0x90] sm:$0xff] %v1529_v55  ;;  %v1448_v56 = vmul.f32 0.6931472, %v1900_v36 }
 0x359   : > { %v1454_v21 = vmul.f32 0.6931472, %v1902_v30  ;;  %v1392_v59 = vpop.xlane.xlu1 %1391 }
 0x35a   : > { %v1511_v34 = vsub.f32 %v3125_v32, %v1448_v56  ;;  %1915 = vlog2.f32 %v1392_v59  ;;  %v1398_v57 = vpop.xlane.xlu0 %1397 }
 0x35b   : > { %v1904_v35 = vpop.eup %1903  ;;  %v1514_v1 = vsub.f32 %v3133_v33, %v1454_v21  ;;  %1917 = vlog2.f32 %v1398_v57 }
 0x35c   : > { %v1906_v8 = vpop.eup %1905  ;;  %1543 = vst [vmem:[%s3249_s4] sm:$0xff] %v1511_v34  ;;  %v1480_v14 = vmul.f32 0.6931472, %v1904_v35 }
 0x35d   : > { %1546 = vst [vmem:[%s3249_s4 + $0x18] sm:$0xff] %v1514_v1  ;;  %v1486_v19 = vmul.f32 0.6931472, %v1906_v8  ;;  %v1424_v2 = vpop.xlane.xlu1 %1423 }
 0x35e   : > { %v1527_v45 = vsub.f32 %v3130_v46, %v1480_v14  ;;  %1919 = vlog2.f32 %v1424_v2  ;;  %v1430_v40 = vpop.xlane.xlu0 %1429 }
 0x35f   : > { %v1908_v32 = vpop.eup %1907  ;;  %v1530_v47 = vsub.f32 %v3138_v39, %v1486_v19  ;;  %1921 = vlog2.f32 %v1430_v40 }
 0x360   : > { %v1910_v20 = vpop.eup %1909  ;;  %1559 = vst [vmem:[%s3249_s4 + $0x80] sm:$0xff] %v1527_v45  ;;  %v1460_v33 = vmul.f32 0.6931472, %v1908_v32 }
 0x361   : > { %1562 = vst [vmem:[%s3249_s4 + $0x98] sm:$0xff] %v1530_v47  ;;  %v1450_v26 = vmul.f32 0.6931472, %v1910_v20 }
 0x362   : > { %v1517_v43 = vsub.f32 %v3145_v15, %v1460_v33  ;;  %v1394_v23 = vpop.xlane.xlu0 %1393 }
 0x363   : > { %v1912_v42 = vpop.eup %1911  ;;  %v1512_v46 = vsub.f32 %v3141_v27, %v1450_v26  ;;  %1923 = vlog2.f32 %v1394_v23 }
 0x364   : > { %v1914_v31 = vpop.eup %1913  ;;  %1549 = vst [vmem:[%s3249_s4 + $0x30] sm:$0xff] %v1517_v43  ;;  %v1492_v49 = vmul.f32 0.6931472, %v1912_v42 }
 0x365   : > { %1544 = vst [vmem:[%s3249_s4 + $0x8] sm:$0xff] %v1512_v46  ;;  %v1482_v39 = vmul.f32 0.6931472, %v1914_v31 }
 0x366   : > { %v1533_v60 = vsub.f32 %v3153_v53, %v1492_v49  ;;  %v1426_v9 = vpop.xlane.xlu0 %1425 }
 0x367   : > { %v1916_v28 = vpop.eup %1915  ;;  %v1528_v6 = vsub.f32 %v3149_v37, %v1482_v39  ;;  %1925 = vlog2.f32 %v1426_v9  ;;  %v1404_v15 = vpop.xlane.xlu1 %1403 }
 0x368   : > { %v1918_v24 = vpop.eup %1917  ;;  %1565 = vst [vmem:[%s3249_s4 + $0xb0] sm:$0xff] %v1533_v60  ;;  %v1456_v27 = vmul.f32 0.6931472, %v1916_v28  ;;  %1927 = vlog2.f32 %v1404_v15 }
 0x369   : > { %1560 = vst [vmem:[%s3249_s4 + $0x88] sm:$0xff] %v1528_v6  ;;  %v1462_v16 = vmul.f32 0.6931472, %v1918_v24 }
 0x36a   : > { %v1515_v29 = vsub.f32 %v3161_v62, %v1456_v27 }
 0x36b   : > { %v1920_v13 = vpop.eup %1919  ;;  %v1518_v53 = vsub.f32 %v3157_v48, %v1462_v16  ;;  %v1436_v25 = vpop.xlane.xlu1 %1435 }
 0x36c   : > { %v1922_v55 = vpop.eup %1921  ;;  %1547 = vst [vmem:[%s3249_s4 + $0x20] sm:$0xff] %v1515_v29  ;;  %v1488_v37 = vmul.f32 0.6931472, %v1920_v13  ;;  %1929 = vlog2.f32 %v1436_v25  ;;  %v1406_v4 = vpop.xlane.xlu0 %1405 }
 0x36d   : > { %1550 = vst [vmem:[%s3249_s4 + $0x38] sm:$0xff] %v1518_v53  ;;  %v1494_v36 = vmul.f32 0.6931472, %v1922_v55  ;;  %1931 = vlog2.f32 %v1406_v4 }
 0x36e   : > { %v1531_v30 = vsub.f32 %v3169_v44, %v1488_v37 }
 0x36f   : > { %v1534_v56 = vsub.f32 %v3165_v51, %v1494_v36  ;;  %v1400_v62 = vpop.xlane.xlu1 %1399 }
 0x370   : > { %v1924_v21 = vpop.eup %1923  ;;  %1563 = vst [vmem:[%s3249_s4 + $0xa0] sm:$0xff] %v1531_v30  ;;  %1933 = vlog2.f32 %v1400_v62  ;;  %v1438_v48 = vpop.xlane.xlu0 %1437 }
 0x371   : > { %1566 = vst [vmem:[%s3249_s4 + $0xb8] sm:$0xff] %v1534_v56  ;;  %v1458_v59 = vmul.f32 0.6931472, %v1924_v21  ;;  %1935 = vlog2.f32 %v1438_v48 }
 0x373   : > { %v1516_v34 = vsub.f32 %v3173_v10, %v1458_v59  ;;  %v1432_v57 = vpop.xlane.xlu1 %1431 }
 0x374   : > { %v1926_v35 = vpop.eup %1925  ;;  %1937 = vlog2.f32 %v1432_v57  ;;  %v1402_v1 = vpop.xlane.xlu0 %1401 }
 0x375   : > { %v1928_v44 = vpop.eup %1927  ;;  %1548 = vst [vmem:[%s3249_s4 + $0x28] sm:$0xff] %v1516_v34  ;;  %v1490_v8 = vmul.f32 0.6931472, %v1926_v35  ;;  %1939 = vlog2.f32 %v1402_v1 }
 0x376   : > { %v1468_v51 = vmul.f32 0.6931472, %v1928_v44 }
 0x377   : > { %v1532_v14 = vsub.f32 %v3178_v5, %v1490_v8 }
 0x378   : > { %v1521_v19 = vsub.f32 %v3182_v38, %v1468_v51  ;;  %v1434_v2 = vpop.xlane.xlu0 %1433 }
 0x379   : > { %v1930_v45 = vpop.eup %1929  ;;  %1564 = vst [vmem:[%s3249_s4 + $0xa8] sm:$0xff] %v1532_v14  ;;  %1941 = vlog2.f32 %v1434_v2 }
 0x37a   : > { %v1932_v10 = vpop.eup %1931  ;;  %1553 = vst [vmem:[%s3249_s4 + $0x50] sm:$0xff] %v1521_v19  ;;  %v1500_v40 = vmul.f32 0.6931472, %v1930_v45 }
 0x37b   : > { %v1470_v32 = vmul.f32 0.6931472, %v1932_v10 }
 0x37c   : > { %v1537_v47 = vsub.f32 %v3186_v3, %v1500_v40 }
 0x37d   : > { %v1934_v20 = vpop.eup %1933  ;;  %v1522_v33 = vsub.f32 %v3189_v50, %v1470_v32 }
 0x37e   : > { %v1936_v26 = vpop.eup %1935  ;;  %1569 = vst [vmem:[%s3249_s4 + $0xd0] sm:$0xff] %v1537_v47  ;;  %v1464_v5 = vmul.f32 0.6931472, %v1934_v20 }
 0x37f   : > { %1554 = vst [vmem:[%s3249_s4 + $0x58] sm:$0xff] %v1522_v33  ;;  %v1502_v38 = vmul.f32 0.6931472, %v1936_v26 }
 0x380   : > { %v1519_v43 = vsub.f32 %v3194_v41, %v1464_v5 }
 0x381   : > { %v1938_v23 = vpop.eup %1937  ;;  %v1538_v42 = vsub.f32 %v3197_v61, %v1502_v38 }
 0x382   : > { %v1940_v46 = vpop.eup %1939  ;;  %1551 = vst [vmem:[%s3249_s4 + $0x40] sm:$0xff] %v1519_v43  ;;  %v1496_v31 = vmul.f32 0.6931472, %v1938_v23 }
 0x383   : > { %1570 = vst [vmem:[%s3249_s4 + $0xd8] sm:$0xff] %v1538_v42  ;;  %v1466_v3 = vmul.f32 0.6931472, %v1940_v46 }
 0x384   : > { %v1535_v50 = vsub.f32 %v3202_v54, %v1496_v31 }
 0x385   : > { %v1520_v49 = vsub.f32 %v3205_v52, %v1466_v3 }
 0x386   : > { %v1942_v39 = vpop.eup %1941  ;;  %1567 = vst [vmem:[%s3249_s4 + $0xc0] sm:$0xff] %v1535_v50 }
 0x387   : > { %1552 = vst [vmem:[%s3249_s4 + $0x48] sm:$0xff] %v1520_v49  ;;  %v1498_v60 = vmul.f32 0.6931472, %v1942_v39 }
 0x389   : > { %v1536_v9 = vsub.f32 %v3210_v17, %v1498_v60 }
 0x38b   : > { %1568 = vst [vmem:[%s3249_s4 + $0xc8] sm:$0xff] %v1536_v9 }
 0x3a2   : > { %v1412_v41 = vpop.xlane.xlu1 %1411 }
 0x3a3   : > { %1943 = vlog2.f32 %v1412_v41 }
 0x3a6   : > { %v1408_v28 = vpop.xlane.xlu1 %1407 }
 0x3a7   : > { %1945 = vlog2.f32 %v1408_v28  ;;  %v1414_v61 = vpop.xlane.xlu0 %1413 }
 0x3a8   : > { %1947 = vlog2.f32 %v1414_v61 }
 0x3aa   : > { %v1440_v6 = vpop.xlane.xlu1 %1439 }
 0x3ab   : > { %1949 = vlog2.f32 %v1440_v6  ;;  %v1410_v15 = vpop.xlane.xlu0 %1409 }
 0x3ac   : > { %1951 = vlog2.f32 %v1410_v15 }
 0x3ae   : > { %v1444_v54 = vpop.xlane.xlu1 %1443 }
 0x3af   : > { %1953 = vlog2.f32 %v1444_v54  ;;  %v1442_v52 = vpop.xlane.xlu0 %1441 }
 0x3b0   : > { %v1944_v24 = vpop.eup %1943  ;;  %1955 = vlog2.f32 %v1442_v52 }
 0x3b1   : > { %v1476_v17 = vmul.f32 0.6931472, %v1944_v24 }
 0x3b3   : > { %v1525_v27 = vsub.f32 %v3214_v7, %v1476_v17  ;;  %v1446_v16 = vpop.xlane.xlu0 %1445 }
 0x3b4   : > { %v1946_v29 = vpop.eup %1945  ;;  %1957 = vlog2.f32 %v1446_v16 }
 0x3b5   : > { %v1948_v13 = vpop.eup %1947  ;;  %1557 = vst [vmem:[%s3249_s4 + $0x70] sm:$0xff] %v1525_v27  ;;  %v1472_v53 = vmul.f32 0.6931472, %v1946_v29 }
 0x3b6   : > { %v1478_v25 = vmul.f32 0.6931472, %v1948_v13 }
 0x3b7   : > { %v1523_v55 = vsub.f32 %v3218_v18, %v1472_v53 }
 0x3b8   : > { %v1950_v37 = vpop.eup %1949  ;;  %v1526_v4 = vsub.f32 %v3221_v63, %v1478_v25 }
 0x3b9   : > { %v1952_v36 = vpop.eup %1951  ;;  %1555 = vst [vmem:[%s3249_s4 + $0x60] sm:$0xff] %v1523_v55  ;;  %v1504_v30 = vmul.f32 0.6931472, %v1950_v37 }
 0x3ba   : > { %1558 = vst [vmem:[%s3249_s4 + $0x78] sm:$0xff] %v1526_v4  ;;  %v1474_v7 = vmul.f32 0.6931472, %v1952_v36 }
 0x3bb   : > { %v1539_v56 = vsub.f32 %v3226_v12, %v1504_v30 }
 0x3bc   : > { %v1954_v62 = vpop.eup %1953  ;;  %v1524_v21 = vsub.f32 %v3229_v11, %v1474_v7 }
 0x3bd   : > { %v1956_v48 = vpop.eup %1955  ;;  %1571 = vst [vmem:[%s3249_s4 + $0xe0] sm:$0xff] %v1539_v56  ;;  %v1508_v18 = vmul.f32 0.6931472, %v1954_v62 }
 0x3be   : > { %1556 = vst [vmem:[%s3249_s4 + $0x68] sm:$0xff] %v1524_v21  ;;  %v1506_v63 = vmul.f32 0.6931472, %v1956_v48 }
 0x3bf   : > { %v1541_v59 = vsub.f32 %v3234_v0, %v1508_v18 }
 0x3c0   : > { %v1540_v34 = vsub.f32 %v3237_v58, %v1506_v63 }
 0x3c1   : > { %v1958_v57 = vpop.eup %1957  ;;  %1573 = vst [vmem:[%s3249_s4 + $0xf0] sm:$0xff] %v1541_v59 }
 0x3c2   : > { %1572 = vst [vmem:[%s3249_s4 + $0xe8] sm:$0xff] %v1540_v34  ;;  %v1510_v12 = vmul.f32 0.6931472, %v1958_v57 }
 0x3c4   : > { %v1542_v11 = vsub.f32 %v3242_v22, %v1510_v12 }
 0x3c6   : > { %1574 = vst [vmem:[%s3249_s4 + $0xf8] sm:$0xff] %v1542_v11 }
 0x3c7   : > { %1972 = shalt.err (!%p1969_p3)
}
 0x3c8   : > { %s1973_s20 = scalar_lea.hbm %s3317_s9, 4096  ;;  %s1977_s26 = scalar_lea.hbm %s3368_s3, 8192 }
 0x3c9   : > { %p1974_p4 = scmp.ne.s32.totalorder %s3317_s9, %s1973_s20  ;;  %p1978_p9 = scmp.lt.s32.totalorder %s3317_s9, %s3368_s3 }
 0x3ca   : > { %p1979_p10 = scmp.lt.s32.totalorder %s1977_s26, %s1973_s20 }
 0x3cb   : > { %p1975_p7 = pnand %p1974_p4, %p2086_p5 }
 0x3cc   : > { %p1980_p11 = por %p1979_p10, %p1978_p9 }
 0x3cd   : > { %p1976_p8 = pneg %p1975_p7 }
 0x3cf   : > { %p1981_p12 = pnand %p1980_p11, %p1976_p8 }
 0x3d1   : > { %1984 = shalt.err (!%p1981_p12)
}
 0x3d2   : > { %s2026_s29 = smov 128   ;;  %s2027_s30 = smov 8  }
 0x3d3   : > { %1761 = dma.vmem_to_hbm [thread:$0]  (%p2086_p5), %s3319_s6, 4096, %s3317_s9, %s3325_s16, %s2026_s29, %s2026_s29, %s2027_s30  }
 0x3d4 PF: > { %p1767_p13 = scmp.ge.s32.totalorder %s2019_s15, 2  ;;  %s1604_s4 = sand.u32 1, %s2007_s12  }
 0x3d5   : > { %s1605_s5 = scalar_lea.sflag [#allocation3], %s1604_s4 }
 0x3d6   : > { %p1764_p0 = pnand %p1767_p13, %p2090_p6 }
 0x3d8   : > { %p1765_p1 = pneg %p1764_p0 }
 0x3da   : > { %2002 = dma.done.wait (%p1765_p1), %s1605_s5, 4096  }
 0x3db   : > { %2004 = vsyncadd (%p1765_p1), %s1605_s5, 4294963200  ;;  %p13_p2 = scmp.ge.s32.totalorder %s2073_s18, 4   ;;  %s3430_s12 = smov %s2011_s13 }
 0x3dc   : > { %s3431_s13 = smov %s2015_s14  ;;  %s3432_s14 = smov %s2084_s21 }
 0x3dd   : > { %s3433_s15 = smov %s2073_s18  ;;  %15 = sbr.rel (!%p13_p2) target bundleno = 3 (0x3), region = 67 }
 0x3e2   :  { %1610 = vsyncpa [#allocation3], 1 }
 0x3e3   :  { %1612 = vsyncpa [#allocation3 + $0x1], 1 }

</bundles_post_ra>
